<compile_context>
chip_gen: v6e
topology: v6e:2x2x1
jax: 0.10.0
libtpu: 0.0.40
codegen_flags: <defaults>
</compile_context>

<pallas_src>
import functools

import numpy as np
import jax
import jax.numpy as jnp
from jax import lax
from jax.experimental import pallas as pl
from jax.experimental.pallas import tpu as pltpu

EPS = 1e-5
_LANE_OFF = 128  # aligned margin inside the tap-shift scratch


# ------------------------------ fused kernel --------------------------------

def _conv_block_kernel(
    x_ref, sel_ref,
    w1_ref, b1_ref, g1_ref, be1_ref,
    w2_ref, b2_ref, g2_ref, be2_ref,
    w3_ref, b3_ref,
    o_ref, ext_ref,
    *, n, hp, wp, wpad, hpad):
    """Whole ConvBlock in one kernel.

    Layout: channels-first, padded spatial flattened into the lane dim.
    Activations: [C, Mp], Mp = n*hpad*wpad; each sample's valid hp x wp block
    sits at offset (1, 1) of its hpad x wpad tile, zeros elsewhere.
    """
    mp = n * hpad * wpad

    sel = sel_ref[...]                                   # [n, Mp] per-sample interior masks
    mask = jnp.sum(sel, axis=0, keepdims=True)           # [1, Mp] union of interiors
    inv_bn = 1.0 / float(n * hp * wp)
    inv_in = 1.0 / float(hp * wp)

    def norm_relu(y, gamma, beta):
        # BatchNorm2d, training mode: per-channel stats over all valid pixels
        # of all samples, biased variance.
        ym = y * mask
        bn_mean = jnp.sum(ym, axis=1, keepdims=True) * inv_bn            # [C,1]
        db = (y - bn_mean) * mask
        bn_var = jnp.sum(db * db, axis=1, keepdims=True) * inv_bn        # [C,1]
        bn = (y - bn_mean) * lax.rsqrt(bn_var + EPS) * gamma + beta
        # InstanceNorm2d: per (sample, channel) spatial stats, no affine.
        inorm = jnp.zeros_like(y)
        for i in range(n):                               # n is tiny & static
            sel_i = sel[i:i + 1, :]                                      # [1,Mp]
            ys = y * sel_i
            m_i = jnp.sum(ys, axis=1, keepdims=True) * inv_in
            d_i = (y - m_i) * sel_i
            v_i = jnp.sum(d_i * d_i, axis=1, keepdims=True) * inv_in
            inorm = inorm + d_i * lax.rsqrt(v_i + EPS)
        # ReLU; re-zero outside the valid region so the next conv's taps see
        # exact zero padding.
        return jnp.maximum(bn + inorm, 0.0) * mask

    def conv3x3(a, w_folded, bias):
        # a: [C, Mp] (zero outside valid region).  Write it once into the
        # margin-padded scratch; the 9 taps are lane-shifted views of it.
        ext_ref[...] = jnp.zeros(ext_ref.shape, jnp.float32)
        ext_ref[:, pl.ds(_LANE_OFF, mp)] = a
        taps = []
        for dy in range(3):
            for dx in range(3):
                s = (dy - 1) * wpad + (dx - 1)           # flat-index shift of this tap
                taps.append(ext_ref[:, pl.ds(_LANE_OFF + s, mp)])
        patches = jnp.concatenate(taps, axis=0)          # [9*C, Mp] (VMEM only)
        # Single matmul, contraction dim K = 9*C (tap-folded).
        return jnp.dot(w_folded, patches,
                       preferred_element_type=jnp.float32) + bias

    # conv_1: 1x1 conv with padding=1 == one matmul over the padded grid plus
    # bias; masking keeps only the hp x wp output region (its border ring,
    # where the input is zero, correctly becomes just the bias).
    fc = (jnp.dot(w1_ref[...], x_ref[...],
                  preferred_element_type=jnp.float32) + b1_ref[...]) * mask
    a1 = norm_relu(fc, g1_ref[...], be1_ref[...])
    c2 = conv3x3(a1, w2_ref[...], b2_ref[...])
    a2 = norm_relu(c2, g2_ref[...], be2_ref[...])
    c3 = conv3x3(a2, w3_ref[...], b3_ref[...])
    # Residual add fused in-kernel; lane-dense [Cout, Mp] store.
    o_ref[...] = (c3 + fc) * mask


# -------------------------------- wrapper ------------------------------------

@jax.jit
def conv_block_forward(x_nchw, params):
    x = x_nchw.astype(jnp.float32)
    n, cin, h, w = x.shape
    cout = params["w1"].shape[-1]
    hp, wp = h + 2, w + 2            # conv_1 (1x1, padding=1) output spatial
    hpad, wpad = hp + 2, wp + 2      # +1 halo ring for the 3x3 convs
    mp = n * hpad * wpad
    mext = mp + 2 * _LANE_OFF

    # Input: place x at offset (2, 2) of each sample's padded tile,
    # channels-first, padded spatial flattened into the lane dim.
    xp = jnp.pad(x, ((0, 0), (0, 0), (2, 2), (2, 2)))          # [n,cin,hpad,wpad]
    x2d = jnp.transpose(xp, (1, 0, 2, 3)).reshape(cin, mp)

    # Pad the tiny contraction dim of conv_1 up to a sublane multiple.
    cin_p = max(8, ((cin + 7) // 8) * 8)
    w1 = jnp.transpose(params["w1"].reshape(cin, cout))        # [cout, cin]
    if cin_p != cin:
        x2d = jnp.pad(x2d, ((0, cin_p - cin), (0, 0)))
        w1 = jnp.pad(w1, ((0, 0), (0, cin_p - cin)))

    # Per-sample validity masks (trace-time constants, one tiny input).
    sel_np = np.zeros((n, n, hpad, wpad), np.float32)
    for i in range(n):
        sel_np[i, i, 1:1 + hp, 1:1 + wp] = 1.0
    sel = jnp.asarray(sel_np.reshape(n, mp))

    # Tap-folded 3x3 weights: [cout, 9*cout] with column index (dy*3+dx)*C+ci.
    w2 = jnp.transpose(params["w2"], (3, 0, 1, 2)).reshape(cout, 9 * cout)
    w3 = jnp.transpose(params["w3"], (3, 0, 1, 2)).reshape(cout, 9 * cout)
    col = lambda v: v.reshape(cout, 1)

    kernel = functools.partial(_conv_block_kernel, n=n, hp=hp, wp=wp,
                               wpad=wpad, hpad=hpad)
    out2d = pl.pallas_call(
        kernel,
        out_shape=jax.ShapeDtypeStruct((cout, mp), jnp.float32),
        scratch_shapes=[pltpu.VMEM((cout, mext), jnp.float32)],
    )(x2d, sel,
      w1, col(params["b1"]), col(params["g1"]), col(params["be1"]),
      w2, col(params["b2"]), col(params["g2"]), col(params["be2"]),
      w3, col(params["b3"]))

    out = out2d.reshape(cout, n, hpad, wpad)[:, :, 1:1 + hp, 1:1 + wp]
    return jnp.transpose(out, (1, 0, 2, 3))                    # NCHW [n,cout,hp,wp]


# --------------------------- pure-JAX reference ------------------------------

def conv_block_reference(x_nchw, params):
    x = jnp.transpose(x_nchw, (0, 2, 3, 1)).astype(jnp.float32)
    dn = ("NHWC", "HWIO", "NHWC")

    def conv(h, w, b, pad):
        out = lax.conv_general_dilated(h, w, (1, 1), [(pad, pad), (pad, pad)],
                                       dimension_numbers=dn)
        return out + b.reshape(1, 1, 1, -1)

    def bn(h, g, be):
        m = jnp.mean(h, axis=(0, 1, 2), keepdims=True)
        v = jnp.mean((h - m) ** 2, axis=(0, 1, 2), keepdims=True)
        return (h - m) * lax.rsqrt(v + EPS) * g.reshape(1, 1, 1, -1) + be.reshape(1, 1, 1, -1)

    def inorm(h):
        m = jnp.mean(h, axis=(1, 2), keepdims=True)
        v = jnp.mean((h - m) ** 2, axis=(1, 2), keepdims=True)
        return (h - m) * lax.rsqrt(v + EPS)

    c1 = conv(x, params["w1"], params["b1"], 1)
    a1 = jax.nn.relu(bn(c1, params["g1"], params["be1"]) + inorm(c1))
    c2 = conv(a1, params["w2"], params["b2"], 1)
    a2 = jax.nn.relu(bn(c2, params["g2"], params["be2"]) + inorm(c2))
    y = conv(a2, params["w3"], params["b3"], 1) + c1
    return jnp.transpose(y, (0, 3, 1, 2))


# ----------------------------------- main ------------------------------------

if __name__ == "__main__":
    key = jax.random.PRNGKey(0)
    ks = jax.random.split(key, 7)
    Cin, Cout = 4, 8

    params = {
        "w1": 0.2 * jax.random.normal(ks[0], (1, 1, Cin, Cout), jnp.float32),   # HWIO
        "b1": 0.1 * jax.random.normal(ks[1], (Cout,), jnp.float32),
        "g1": jnp.ones((Cout,), jnp.float32),
        "be1": jnp.zeros((Cout,), jnp.float32),
        "w2": 0.1 * jax.random.normal(ks[2], (3, 3, Cout, Cout), jnp.float32),
        "b2": 0.1 * jax.random.normal(ks[3], (Cout,), jnp.float32),
        "g2": jnp.ones((Cout,), jnp.float32),
        "be2": jnp.zeros((Cout,), jnp.float32),
        "w3": 0.1 * jax.random.normal(ks[4], (3, 3, Cout, Cout), jnp.float32),
        "b3": 0.1 * jax.random.normal(ks[5], (Cout,), jnp.float32),
    }

    x = jax.random.normal(ks[6], (2, Cin, 16, 16), jnp.float32)   # NCHW like PyTorch

    out = conv_block_forward(x, params)
    out = jax.block_until_ready(out)
    assert out.shape == (2, Cout, 18, 18), out.shape   # 1x1 conv w/ padding=1 grows spatial

    ref = conv_block_reference(x, params)
    max_err = float(jnp.max(jnp.abs(out - ref)))
    assert max_err < 1e-3, f"max abs error {max_err}"

    print("KERNEL_OK")
</pallas_src>

<mosaic_0001>
module attributes {stable_mosaic.version = 11 : i64} {
  func.func @_conv_block_kernel(%arg0: memref<8x800xf32, #tpu.memory_space<vmem>>, %arg1: memref<2x800xf32, #tpu.memory_space<vmem>>, %arg2: memref<8x8xf32, #tpu.memory_space<vmem>>, %arg3: memref<8x1xf32, #tpu.memory_space<vmem>>, %arg4: memref<8x1xf32, #tpu.memory_space<vmem>>, %arg5: memref<8x1xf32, #tpu.memory_space<vmem>>, %arg6: memref<8x72xf32, #tpu.memory_space<vmem>>, %arg7: memref<8x1xf32, #tpu.memory_space<vmem>>, %arg8: memref<8x1xf32, #tpu.memory_space<vmem>>, %arg9: memref<8x1xf32, #tpu.memory_space<vmem>>, %arg10: memref<8x72xf32, #tpu.memory_space<vmem>>, %arg11: memref<8x1xf32, #tpu.memory_space<vmem>>, %arg12: memref<8x800xf32, #tpu.memory_space<vmem>>, %arg13: memref<8x1056xf32, #tpu.memory_space<vmem>>) attributes {dimension_semantics = [], scalar_prefetch = 0 : i64, scratch_operands = 1 : i64, tpu.core_type = #tpu.core_type<tc>} {
    %c0 = arith.constant 0 : index
    %c0_0 = arith.constant 0 : index
    %0 = vector.load %arg1[%c0, %c0_0] : memref<2x800xf32, #tpu.memory_space<vmem>>, vector<2x800xf32>
    %cst = arith.constant dense<0.000000e+00> : vector<800xf32>
    %1 = vector.multi_reduction <add>, %0, %cst [0] : vector<2x800xf32> to vector<800xf32>
    %2 = vector.shape_cast %1 : vector<800xf32> to vector<1x800xf32>
    %c0_1 = arith.constant 0 : index
    %c0_2 = arith.constant 0 : index
    %3 = vector.load %arg2[%c0_1, %c0_2] : memref<8x8xf32, #tpu.memory_space<vmem>>, vector<8x8xf32>
    %c0_3 = arith.constant 0 : index
    %c0_4 = arith.constant 0 : index
    %4 = vector.load %arg0[%c0_3, %c0_4] : memref<8x800xf32, #tpu.memory_space<vmem>>, vector<8x800xf32>
    %cst_5 = arith.constant dense<0.000000e+00> : vector<8x800xf32>
    %5 = tpu.matmul %3, %4, %cst_5 {dimension_numbers = #tpu.dot_dimension_numbers<[1], [0], [0], [1], [0, 0, 1, 1], [], []>} : vector<8x8xf32>, vector<8x800xf32>, vector<8x800xf32> -> vector<8x800xf32>
    %c0_6 = arith.constant 0 : index
    %c0_7 = arith.constant 0 : index
    %6 = vector.load %arg3[%c0_6, %c0_7] : memref<8x1xf32, #tpu.memory_space<vmem>>, vector<8x1xf32>
    %7 = vector.broadcast %6 : vector<8x1xf32> to vector<8x800xf32>
    %8 = arith.addf %5, %7 : vector<8x800xf32>
    %9 = vector.broadcast %2 : vector<1x800xf32> to vector<8x800xf32>
    %10 = arith.mulf %8, %9 : vector<8x800xf32>
    %c0_8 = arith.constant 0 : index
    %c0_9 = arith.constant 0 : index
    %11 = vector.load %arg4[%c0_8, %c0_9] : memref<8x1xf32, #tpu.memory_space<vmem>>, vector<8x1xf32>
    %c0_10 = arith.constant 0 : index
    %c0_11 = arith.constant 0 : index
    %12 = vector.load %arg5[%c0_10, %c0_11] : memref<8x1xf32, #tpu.memory_space<vmem>>, vector<8x1xf32>
    %13 = vector.broadcast %2 : vector<1x800xf32> to vector<8x800xf32>
    %14 = arith.mulf %10, %13 : vector<8x800xf32>
    %cst_12 = arith.constant dense<0.000000e+00> : vector<8xf32>
    %15 = vector.multi_reduction <add>, %14, %cst_12 [1] : vector<8x800xf32> to vector<8xf32>
    %16 = vector.shape_cast %15 : vector<8xf32> to vector<8x1xf32>
    %cst_13 = arith.constant 0.00154320989 : f32
    %17 = vector.broadcast %cst_13 : f32 to vector<8x1xf32>
    %18 = arith.mulf %16, %17 : vector<8x1xf32>
    %19 = vector.broadcast %18 : vector<8x1xf32> to vector<8x800xf32>
    %20 = arith.subf %10, %19 : vector<8x800xf32>
    %21 = vector.broadcast %2 : vector<1x800xf32> to vector<8x800xf32>
    %22 = arith.mulf %20, %21 : vector<8x800xf32>
    %23 = arith.mulf %22, %22 : vector<8x800xf32>
    %cst_14 = arith.constant dense<0.000000e+00> : vector<8xf32>
    %24 = vector.multi_reduction <add>, %23, %cst_14 [1] : vector<8x800xf32> to vector<8xf32>
    %25 = vector.shape_cast %24 : vector<8xf32> to vector<8x1xf32>
    %cst_15 = arith.constant 0.00154320989 : f32
    %26 = vector.broadcast %cst_15 : f32 to vector<8x1xf32>
    %27 = arith.mulf %25, %26 : vector<8x1xf32>
    %28 = vector.broadcast %18 : vector<8x1xf32> to vector<8x800xf32>
    %29 = arith.subf %10, %28 : vector<8x800xf32>
    %cst_16 = arith.constant 9.99999974E-6 : f32
    %30 = vector.broadcast %cst_16 : f32 to vector<8x1xf32>
    %31 = arith.addf %27, %30 : vector<8x1xf32>
    %32 = math.rsqrt %31 : vector<8x1xf32>
    %33 = vector.broadcast %32 : vector<8x1xf32> to vector<8x800xf32>
    %34 = arith.mulf %29, %33 : vector<8x800xf32>
    %35 = vector.broadcast %11 : vector<8x1xf32> to vector<8x800xf32>
    %36 = arith.mulf %34, %35 : vector<8x800xf32>
    %37 = vector.broadcast %12 : vector<8x1xf32> to vector<8x800xf32>
    %38 = arith.addf %36, %37 : vector<8x800xf32>
    %cst_17 = arith.constant 0.000000e+00 : f32
    %39 = vector.broadcast %cst_17 : f32 to vector<8x800xf32>
    %40 = vector.extract_strided_slice %0 {offsets = [0, 0], sizes = [1, 800], strides = [1, 1]} : vector<2x800xf32> to vector<1x800xf32>
    %41 = vector.broadcast %40 : vector<1x800xf32> to vector<8x800xf32>
    %42 = arith.mulf %10, %41 : vector<8x800xf32>
    %cst_18 = arith.constant dense<0.000000e+00> : vector<8xf32>
    %43 = vector.multi_reduction <add>, %42, %cst_18 [1] : vector<8x800xf32> to vector<8xf32>
    %44 = vector.shape_cast %43 : vector<8xf32> to vector<8x1xf32>
    %cst_19 = arith.constant 0.00308641978 : f32
    %45 = vector.broadcast %cst_19 : f32 to vector<8x1xf32>
    %46 = arith.mulf %44, %45 : vector<8x1xf32>
    %47 = vector.broadcast %46 : vector<8x1xf32> to vector<8x800xf32>
    %48 = arith.subf %10, %47 : vector<8x800xf32>
    %49 = vector.broadcast %40 : vector<1x800xf32> to vector<8x800xf32>
    %50 = arith.mulf %48, %49 : vector<8x800xf32>
    %51 = arith.mulf %50, %50 : vector<8x800xf32>
    %cst_20 = arith.constant dense<0.000000e+00> : vector<8xf32>
    %52 = vector.multi_reduction <add>, %51, %cst_20 [1] : vector<8x800xf32> to vector<8xf32>
    %53 = vector.shape_cast %52 : vector<8xf32> to vector<8x1xf32>
    %cst_21 = arith.constant 0.00308641978 : f32
    %54 = vector.broadcast %cst_21 : f32 to vector<8x1xf32>
    %55 = arith.mulf %53, %54 : vector<8x1xf32>
    %cst_22 = arith.constant 9.99999974E-6 : f32
    %56 = vector.broadcast %cst_22 : f32 to vector<8x1xf32>
    %57 = arith.addf %55, %56 : vector<8x1xf32>
    %58 = math.rsqrt %57 : vector<8x1xf32>
    %59 = vector.broadcast %58 : vector<8x1xf32> to vector<8x800xf32>
    %60 = arith.mulf %50, %59 : vector<8x800xf32>
    %61 = arith.addf %39, %60 : vector<8x800xf32>
    %62 = vector.extract_strided_slice %0 {offsets = [1, 0], sizes = [1, 800], strides = [1, 1]} : vector<2x800xf32> to vector<1x800xf32>
    %63 = vector.broadcast %62 : vector<1x800xf32> to vector<8x800xf32>
    %64 = arith.mulf %10, %63 : vector<8x800xf32>
    %cst_23 = arith.constant dense<0.000000e+00> : vector<8xf32>
    %65 = vector.multi_reduction <add>, %64, %cst_23 [1] : vector<8x800xf32> to vector<8xf32>
    %66 = vector.shape_cast %65 : vector<8xf32> to vector<8x1xf32>
    %cst_24 = arith.constant 0.00308641978 : f32
    %67 = vector.broadcast %cst_24 : f32 to vector<8x1xf32>
    %68 = arith.mulf %66, %67 : vector<8x1xf32>
    %69 = vector.broadcast %68 : vector<8x1xf32> to vector<8x800xf32>
    %70 = arith.subf %10, %69 : vector<8x800xf32>
    %71 = vector.broadcast %62 : vector<1x800xf32> to vector<8x800xf32>
    %72 = arith.mulf %70, %71 : vector<8x800xf32>
    %73 = arith.mulf %72, %72 : vector<8x800xf32>
    %cst_25 = arith.constant dense<0.000000e+00> : vector<8xf32>
    %74 = vector.multi_reduction <add>, %73, %cst_25 [1] : vector<8x800xf32> to vector<8xf32>
    %75 = vector.shape_cast %74 : vector<8xf32> to vector<8x1xf32>
    %cst_26 = arith.constant 0.00308641978 : f32
    %76 = vector.broadcast %cst_26 : f32 to vector<8x1xf32>
    %77 = arith.mulf %75, %76 : vector<8x1xf32>
    %cst_27 = arith.constant 9.99999974E-6 : f32
    %78 = vector.broadcast %cst_27 : f32 to vector<8x1xf32>
    %79 = arith.addf %77, %78 : vector<8x1xf32>
    %80 = math.rsqrt %79 : vector<8x1xf32>
    %81 = vector.broadcast %80 : vector<8x1xf32> to vector<8x800xf32>
    %82 = arith.mulf %72, %81 : vector<8x800xf32>
    %83 = arith.addf %61, %82 : vector<8x800xf32>
    %84 = arith.addf %38, %83 : vector<8x800xf32>
    %cst_28 = arith.constant 0.000000e+00 : f32
    %85 = vector.broadcast %cst_28 : f32 to vector<8x800xf32>
    %86 = arith.maximumf %84, %85 : vector<8x800xf32>
    %87 = vector.broadcast %2 : vector<1x800xf32> to vector<8x800xf32>
    %88 = arith.mulf %86, %87 : vector<8x800xf32>
    %c0_29 = arith.constant 0 : index
    %c0_30 = arith.constant 0 : index
    %89 = vector.load %arg6[%c0_29, %c0_30] : memref<8x72xf32, #tpu.memory_space<vmem>>, vector<8x72xf32>
    %c0_31 = arith.constant 0 : index
    %c0_32 = arith.constant 0 : index
    %90 = vector.load %arg7[%c0_31, %c0_32] : memref<8x1xf32, #tpu.memory_space<vmem>>, vector<8x1xf32>
    %cst_33 = arith.constant 0.000000e+00 : f32
    %91 = vector.broadcast %cst_33 : f32 to vector<8x1056xf32>
    %c0_34 = arith.constant 0 : index
    %c0_35 = arith.constant 0 : index
    %92 = vector.load %arg13[%c0_34, %c0_35] : memref<8x1056xf32, #tpu.memory_space<vmem>>, vector<8x1056xf32>
    tpu.vector_store %arg13[%c0_34, %c0_35], %91 {strides = array<i32>} : memref<8x1056xf32, #tpu.memory_space<vmem>>, vector<8x1056xf32>,
    %c0_36 = arith.constant 0 : index
    %c128 = arith.constant 128 : index
    %93 = vector.load %arg13[%c0_36, %c128] : memref<8x1056xf32, #tpu.memory_space<vmem>>, vector<8x800xf32>
    tpu.vector_store %arg13[%c0_36, %c128], %88 {strides = array<i32>} : memref<8x1056xf32, #tpu.memory_space<vmem>>, vector<8x800xf32>,
    %c0_37 = arith.constant 0 : index
    %c107 = arith.constant 107 : index
    %94 = vector.load %arg13[%c0_37, %c107] : memref<8x1056xf32, #tpu.memory_space<vmem>>, vector<8x800xf32>
    %c0_38 = arith.constant 0 : index
    %c108 = arith.constant 108 : index
    %95 = vector.load %arg13[%c0_38, %c108] : memref<8x1056xf32, #tpu.memory_space<vmem>>, vector<8x800xf32>
    %c0_39 = arith.constant 0 : index
    %c109 = arith.constant 109 : index
    %96 = vector.load %arg13[%c0_39, %c109] : memref<8x1056xf32, #tpu.memory_space<vmem>>, vector<8x800xf32>
    %c0_40 = arith.constant 0 : index
    %c127 = arith.constant 127 : index
    %97 = vector.load %arg13[%c0_40, %c127] : memref<8x1056xf32, #tpu.memory_space<vmem>>, vector<8x800xf32>
    %c0_41 = arith.constant 0 : index
    %c128_42 = arith.constant 128 : index
    %98 = vector.load %arg13[%c0_41, %c128_42] : memref<8x1056xf32, #tpu.memory_space<vmem>>, vector<8x800xf32>
    %c0_43 = arith.constant 0 : index
    %c129 = arith.constant 129 : index
    %99 = vector.load %arg13[%c0_43, %c129] : memref<8x1056xf32, #tpu.memory_space<vmem>>, vector<8x800xf32>
    %c0_44 = arith.constant 0 : index
    %c147 = arith.constant 147 : index
    %100 = vector.load %arg13[%c0_44, %c147] : memref<8x1056xf32, #tpu.memory_space<vmem>>, vector<8x800xf32>
    %c0_45 = arith.constant 0 : index
    %c148 = arith.constant 148 : index
    %101 = vector.load %arg13[%c0_45, %c148] : memref<8x1056xf32, #tpu.memory_space<vmem>>, vector<8x800xf32>
    %c0_46 = arith.constant 0 : index
    %c149 = arith.constant 149 : index
    %102 = vector.load %arg13[%c0_46, %c149] : memref<8x1056xf32, #tpu.memory_space<vmem>>, vector<8x800xf32>
    %103 = tpu.concatenate %94, %95, %96, %97, %98, %99, %100, %101, %102 in 0 : vector<8x800xf32>, vector<8x800xf32>, vector<8x800xf32>, vector<8x800xf32>, vector<8x800xf32>, vector<8x800xf32>, vector<8x800xf32>, vector<8x800xf32>, vector<8x800xf32> -> vector<72x800xf32>
    %cst_47 = arith.constant dense<0.000000e+00> : vector<8x800xf32>
    %104 = tpu.matmul %89, %103, %cst_47 {dimension_numbers = #tpu.dot_dimension_numbers<[1], [0], [0], [1], [0, 0, 1, 1], [], []>} : vector<8x72xf32>, vector<72x800xf32>, vector<8x800xf32> -> vector<8x800xf32>
    %105 = vector.broadcast %90 : vector<8x1xf32> to vector<8x800xf32>
    %106 = arith.addf %104, %105 : vector<8x800xf32>
    %c0_48 = arith.constant 0 : index
    %c0_49 = arith.constant 0 : index
    %107 = vector.load %arg8[%c0_48, %c0_49] : memref<8x1xf32, #tpu.memory_space<vmem>>, vector<8x1xf32>
    %c0_50 = arith.constant 0 : index
    %c0_51 = arith.constant 0 : index
    %108 = vector.load %arg9[%c0_50, %c0_51] : memref<8x1xf32, #tpu.memory_space<vmem>>, vector<8x1xf32>
    %109 = vector.broadcast %2 : vector<1x800xf32> to vector<8x800xf32>
    %110 = arith.mulf %106, %109 : vector<8x800xf32>
    %cst_52 = arith.constant dense<0.000000e+00> : vector<8xf32>
    %111 = vector.multi_reduction <add>, %110, %cst_52 [1] : vector<8x800xf32> to vector<8xf32>
    %112 = vector.shape_cast %111 : vector<8xf32> to vector<8x1xf32>
    %cst_53 = arith.constant 0.00154320989 : f32
    %113 = vector.broadcast %cst_53 : f32 to vector<8x1xf32>
    %114 = arith.mulf %112, %113 : vector<8x1xf32>
    %115 = vector.broadcast %114 : vector<8x1xf32> to vector<8x800xf32>
    %116 = arith.subf %106, %115 : vector<8x800xf32>
    %117 = vector.broadcast %2 : vector<1x800xf32> to vector<8x800xf32>
    %118 = arith.mulf %116, %117 : vector<8x800xf32>
    %119 = arith.mulf %118, %118 : vector<8x800xf32>
    %cst_54 = arith.constant dense<0.000000e+00> : vector<8xf32>
    %120 = vector.multi_reduction <add>, %119, %cst_54 [1] : vector<8x800xf32> to vector<8xf32>
    %121 = vector.shape_cast %120 : vector<8xf32> to vector<8x1xf32>
    %cst_55 = arith.constant 0.00154320989 : f32
    %122 = vector.broadcast %cst_55 : f32 to vector<8x1xf32>
    %123 = arith.mulf %121, %122 : vector<8x1xf32>
    %124 = vector.broadcast %114 : vector<8x1xf32> to vector<8x800xf32>
    %125 = arith.subf %106, %124 : vector<8x800xf32>
    %cst_56 = arith.constant 9.99999974E-6 : f32
    %126 = vector.broadcast %cst_56 : f32 to vector<8x1xf32>
    %127 = arith.addf %123, %126 : vector<8x1xf32>
    %128 = math.rsqrt %127 : vector<8x1xf32>
    %129 = vector.broadcast %128 : vector<8x1xf32> to vector<8x800xf32>
    %130 = arith.mulf %125, %129 : vector<8x800xf32>
    %131 = vector.broadcast %107 : vector<8x1xf32> to vector<8x800xf32>
    %132 = arith.mulf %130, %131 : vector<8x800xf32>
    %133 = vector.broadcast %108 : vector<8x1xf32> to vector<8x800xf32>
    %134 = arith.addf %132, %133 : vector<8x800xf32>
    %cst_57 = arith.constant 0.000000e+00 : f32
    %135 = vector.broadcast %cst_57 : f32 to vector<8x800xf32>
    %136 = vector.extract_strided_slice %0 {offsets = [0, 0], sizes = [1, 800], strides = [1, 1]} : vector<2x800xf32> to vector<1x800xf32>
    %137 = vector.broadcast %136 : vector<1x800xf32> to vector<8x800xf32>
    %138 = arith.mulf %106, %137 : vector<8x800xf32>
    %cst_58 = arith.constant dense<0.000000e+00> : vector<8xf32>
    %139 = vector.multi_reduction <add>, %138, %cst_58 [1] : vector<8x800xf32> to vector<8xf32>
    %140 = vector.shape_cast %139 : vector<8xf32> to vector<8x1xf32>
    %cst_59 = arith.constant 0.00308641978 : f32
    %141 = vector.broadcast %cst_59 : f32 to vector<8x1xf32>
    %142 = arith.mulf %140, %141 : vector<8x1xf32>
    %143 = vector.broadcast %142 : vector<8x1xf32> to vector<8x800xf32>
    %144 = arith.subf %106, %143 : vector<8x800xf32>
    %145 = vector.broadcast %136 : vector<1x800xf32> to vector<8x800xf32>
    %146 = arith.mulf %144, %145 : vector<8x800xf32>
    %147 = arith.mulf %146, %146 : vector<8x800xf32>
    %cst_60 = arith.constant dense<0.000000e+00> : vector<8xf32>
    %148 = vector.multi_reduction <add>, %147, %cst_60 [1] : vector<8x800xf32> to vector<8xf32>
    %149 = vector.shape_cast %148 : vector<8xf32> to vector<8x1xf32>
    %cst_61 = arith.constant 0.00308641978 : f32
    %150 = vector.broadcast %cst_61 : f32 to vector<8x1xf32>
    %151 = arith.mulf %149, %150 : vector<8x1xf32>
    %cst_62 = arith.constant 9.99999974E-6 : f32
    %152 = vector.broadcast %cst_62 : f32 to vector<8x1xf32>
    %153 = arith.addf %151, %152 : vector<8x1xf32>
    %154 = math.rsqrt %153 : vector<8x1xf32>
    %155 = vector.broadcast %154 : vector<8x1xf32> to vector<8x800xf32>
    %156 = arith.mulf %146, %155 : vector<8x800xf32>
    %157 = arith.addf %135, %156 : vector<8x800xf32>
    %158 = vector.extract_strided_slice %0 {offsets = [1, 0], sizes = [1, 800], strides = [1, 1]} : vector<2x800xf32> to vector<1x800xf32>
    %159 = vector.broadcast %158 : vector<1x800xf32> to vector<8x800xf32>
    %160 = arith.mulf %106, %159 : vector<8x800xf32>
    %cst_63 = arith.constant dense<0.000000e+00> : vector<8xf32>
    %161 = vector.multi_reduction <add>, %160, %cst_63 [1] : vector<8x800xf32> to vector<8xf32>
    %162 = vector.shape_cast %161 : vector<8xf32> to vector<8x1xf32>
    %cst_64 = arith.constant 0.00308641978 : f32
    %163 = vector.broadcast %cst_64 : f32 to vector<8x1xf32>
    %164 = arith.mulf %162, %163 : vector<8x1xf32>
    %165 = vector.broadcast %164 : vector<8x1xf32> to vector<8x800xf32>
    %166 = arith.subf %106, %165 : vector<8x800xf32>
    %167 = vector.broadcast %158 : vector<1x800xf32> to vector<8x800xf32>
    %168 = arith.mulf %166, %167 : vector<8x800xf32>
    %169 = arith.mulf %168, %168 : vector<8x800xf32>
    %cst_65 = arith.constant dense<0.000000e+00> : vector<8xf32>
    %170 = vector.multi_reduction <add>, %169, %cst_65 [1] : vector<8x800xf32> to vector<8xf32>
    %171 = vector.shape_cast %170 : vector<8xf32> to vector<8x1xf32>
    %cst_66 = arith.constant 0.00308641978 : f32
    %172 = vector.broadcast %cst_66 : f32 to vector<8x1xf32>
    %173 = arith.mulf %171, %172 : vector<8x1xf32>
    %cst_67 = arith.constant 9.99999974E-6 : f32
    %174 = vector.broadcast %cst_67 : f32 to vector<8x1xf32>
    %175 = arith.addf %173, %174 : vector<8x1xf32>
    %176 = math.rsqrt %175 : vector<8x1xf32>
    %177 = vector.broadcast %176 : vector<8x1xf32> to vector<8x800xf32>
    %178 = arith.mulf %168, %177 : vector<8x800xf32>
    %179 = arith.addf %157, %178 : vector<8x800xf32>
    %180 = arith.addf %134, %179 : vector<8x800xf32>
    %cst_68 = arith.constant 0.000000e+00 : f32
    %181 = vector.broadcast %cst_68 : f32 to vector<8x800xf32>
    %182 = arith.maximumf %180, %181 : vector<8x800xf32>
    %183 = vector.broadcast %2 : vector<1x800xf32> to vector<8x800xf32>
    %184 = arith.mulf %182, %183 : vector<8x800xf32>
    %c0_69 = arith.constant 0 : index
    %c0_70 = arith.constant 0 : index
    %185 = vector.load %arg10[%c0_69, %c0_70] : memref<8x72xf32, #tpu.memory_space<vmem>>, vector<8x72xf32>
    %c0_71 = arith.constant 0 : index
    %c0_72 = arith.constant 0 : index
    %186 = vector.load %arg11[%c0_71, %c0_72] : memref<8x1xf32, #tpu.memory_space<vmem>>, vector<8x1xf32>
    %cst_73 = arith.constant 0.000000e+00 : f32
    %187 = vector.broadcast %cst_73 : f32 to vector<8x1056xf32>
    %c0_74 = arith.constant 0 : index
    %c0_75 = arith.constant 0 : index
    %188 = vector.load %arg13[%c0_74, %c0_75] : memref<8x1056xf32, #tpu.memory_space<vmem>>, vector<8x1056xf32>
    tpu.vector_store %arg13[%c0_74, %c0_75], %187 {strides = array<i32>} : memref<8x1056xf32, #tpu.memory_space<vmem>>, vector<8x1056xf32>,
    %c0_76 = arith.constant 0 : index
    %c128_77 = arith.constant 128 : index
    %189 = vector.load %arg13[%c0_76, %c128_77] : memref<8x1056xf32, #tpu.memory_space<vmem>>, vector<8x800xf32>
    tpu.vector_store %arg13[%c0_76, %c128_77], %184 {strides = array<i32>} : memref<8x1056xf32, #tpu.memory_space<vmem>>, vector<8x800xf32>,
    %c0_78 = arith.constant 0 : index
    %c107_79 = arith.constant 107 : index
    %190 = vector.load %arg13[%c0_78, %c107_79] : memref<8x1056xf32, #tpu.memory_space<vmem>>, vector<8x800xf32>
    %c0_80 = arith.constant 0 : index
    %c108_81 = arith.constant 108 : index
    %191 = vector.load %arg13[%c0_80, %c108_81] : memref<8x1056xf32, #tpu.memory_space<vmem>>, vector<8x800xf32>
    %c0_82 = arith.constant 0 : index
    %c109_83 = arith.constant 109 : index
    %192 = vector.load %arg13[%c0_82, %c109_83] : memref<8x1056xf32, #tpu.memory_space<vmem>>, vector<8x800xf32>
    %c0_84 = arith.constant 0 : index
    %c127_85 = arith.constant 127 : index
    %193 = vector.load %arg13[%c0_84, %c127_85] : memref<8x1056xf32, #tpu.memory_space<vmem>>, vector<8x800xf32>
    %c0_86 = arith.constant 0 : index
    %c128_87 = arith.constant 128 : index
    %194 = vector.load %arg13[%c0_86, %c128_87] : memref<8x1056xf32, #tpu.memory_space<vmem>>, vector<8x800xf32>
    %c0_88 = arith.constant 0 : index
    %c129_89 = arith.constant 129 : index
    %195 = vector.load %arg13[%c0_88, %c129_89] : memref<8x1056xf32, #tpu.memory_space<vmem>>, vector<8x800xf32>
    %c0_90 = arith.constant 0 : index
    %c147_91 = arith.constant 147 : index
    %196 = vector.load %arg13[%c0_90, %c147_91] : memref<8x1056xf32, #tpu.memory_space<vmem>>, vector<8x800xf32>
    %c0_92 = arith.constant 0 : index
    %c148_93 = arith.constant 148 : index
    %197 = vector.load %arg13[%c0_92, %c148_93] : memref<8x1056xf32, #tpu.memory_space<vmem>>, vector<8x800xf32>
    %c0_94 = arith.constant 0 : index
    %c149_95 = arith.constant 149 : index
    %198 = vector.load %arg13[%c0_94, %c149_95] : memref<8x1056xf32, #tpu.memory_space<vmem>>, vector<8x800xf32>
    %199 = tpu.concatenate %190, %191, %192, %193, %194, %195, %196, %197, %198 in 0 : vector<8x800xf32>, vector<8x800xf32>, vector<8x800xf32>, vector<8x800xf32>, vector<8x800xf32>, vector<8x800xf32>, vector<8x800xf32>, vector<8x800xf32>, vector<8x800xf32> -> vector<72x800xf32>
    %cst_96 = arith.constant dense<0.000000e+00> : vector<8x800xf32>
    %200 = tpu.matmul %185, %199, %cst_96 {dimension_numbers = #tpu.dot_dimension_numbers<[1], [0], [0], [1], [0, 0, 1, 1], [], []>} : vector<8x72xf32>, vector<72x800xf32>, vector<8x800xf32> -> vector<8x800xf32>
    %201 = vector.broadcast %186 : vector<8x1xf32> to vector<8x800xf32>
    %202 = arith.addf %200, %201 : vector<8x800xf32>
    %203 = arith.addf %202, %10 : vector<8x800xf32>
    %204 = vector.broadcast %2 : vector<1x800xf32> to vector<8x800xf32>
    %205 = arith.mulf %203, %204 : vector<8x800xf32>
    %c0_97 = arith.constant 0 : index
    %c0_98 = arith.constant 0 : index
    %206 = vector.load %arg12[%c0_97, %c0_98] : memref<8x800xf32, #tpu.memory_space<vmem>>, vector<8x800xf32>
    tpu.vector_store %arg12[%c0_97, %c0_98], %205 {strides = array<i32>} : memref<8x800xf32, #tpu.memory_space<vmem>>, vector<8x800xf32>,
    return
  }
}

</mosaic_0001>

<bundles_post_ra>
// kernel: conv_block_forward.1
= control target key start
LH: loop header
LB: loop body
LE: loop exit
PB: predicated region body
PF: predicated region fallthrough
CT: control target
= control target key end

     0   :  { %v4687_v3 = vmov 0.0   ;;  %vm150_vm0 = vcmask 64512   ;;  %vm2711_vm1 = vmmov 0   ;;  %v2712_v11 = vmov 0   ;;  %s2718_s27 = smov 87   ;;  %s2719_s28 = smov 86   ;;  %s4674_s0 = inlined_call_operand.vmem [shape: f32[8,800], index: 0, kind: input, shape index: {}]   ;;  %s4675_s2 = inlined_call_operand.vmem [shape: f32[8,8], index: 2, kind: input, shape index: {}]   ;;  %s4676_s3 = inlined_call_operand.vmem [shape: f32[8,1], index: 3, kind: input, shape index: {}]   ;;  %s4677_s4 = inlined_call_operand.vmem [shape: f32[8,1], index: 4, kind: input, shape index: {}]   ;;  %s4678_s1 = inlined_call_operand.vmem [shape: f32[2,800], index: 1, kind: input, shape index: {}]   ;;  %s4679_s5 = inlined_call_operand.vmem [shape: f32[8,1], index: 5, kind: input, shape index: {}]   ;;  %s4680_s7 = inlined_call_operand.vmem [shape: f32[8,1], index: 7, kind: input, shape index: {}]   ;;  %s4681_s9 = inlined_call_operand.vmem [shape: f32[8,1], index: 9, kind: input, shape index: {}]   ;;  %s4682_s8 = inlined_call_operand.vmem [shape: f32[8,1], index: 8, kind: input, shape index: {}]   ;;  %s4683_s6 = inlined_call_operand.vmem [shape: f32[8,72], index: 6, kind: input, shape index: {}]   ;;  %s4684_s11 = inlined_call_operand.vmem [shape: f32[8,1], index: 11, kind: input, shape index: {}]   ;;  %s4685_s10 = inlined_call_operand.vmem [shape: f32[8,72], index: 10, kind: input, shape index: {}]   ;;  %s4686_s12 = inlined_call_operand.vmem [shape: f32[8,800], index: 12, kind: output, shape index: {}]  }
   0x1   :  { %v138_v0 = vld [vmem:[%s4674_s0 + $0x8] sm:$0xff]  ;;  %v140_v1 = vld [vmem:[%s4674_s0 + $0x18] sm:$0xff]  ;;  %v137_v2 = vld [vmem:[%s4674_s0] sm:$0xff]  ;;  %218 = vmatprep.mubr.f32.mxu0 %v4687_v3  ;;  %812 = vst [vmem:[#allocation2 + $0x38] sm:$0xff] %v4687_v3  ;;  %289 = vmatprep.mubr.f32.mxu1 %v4687_v3  ;;  %vm458_vm2 = vcmask 261120   ;;  %v49_v14 = vlaneseq  ;;  %vm85_vm3 = vcmask 1041408  }
   0x2   :  { %1811 = vst [vmem:[#allocation2] sm:$0xff] %v4687_v3  ;;  %184 = vmatprep.subr.mxu0 %v138_v0  ;;  %255 = vmatprep.subr.mxu1 %v140_v1  ;;  %v139_v4 = vld [vmem:[%s4674_s0 + $0x10] sm:$0xff]  ;;  %v136_v5 = vld [vmem:[%s4675_s2] sm:$0xff]  ;;  %v142_v6 = vld [vmem:[%s4674_s0 + $0x28] sm:$0xff]  ;;  %v2716_v12 = vmov 1983009808  }
   0x3   :  { %185 = vmatpush1.msra.mxu0 %v137_v2  ;;  %256 = vmatpush1.msra.mxu1 %v139_v4  ;;  %v141_v7 = vld [vmem:[%s4674_s0 + $0x20] sm:$0xff]  ;;  %v143_v8 = vld [vmem:[%s4674_s0 + $0x30] sm:$0xff]  ;;  %s2713_s0 = smov 108   ;;  %v47_v13 = vunpack.c.l.s4 %v2716_v12  ;;  %v2838_v16 = vshrl.u32 %v49_v14, 7  ;;  %v2852_v22 = vld [vmem:[%s4678_s1 + $0x8] sm:$0x3f] }
   0x4   :  { %2598 = vmatmul.mubr.msk.f32.vlgmr.msra.gmra.mxu0 %vm150_vm0, %v136_v5  ;;  %2599 = vmatmul.mubr.msk.f32.vlgmr.msra.gmra.mxu1 %vm150_vm0, %v136_v5  ;;  %v144_v9 = vld [vmem:[%s4676_s3] sm:$0xff]  ;;  %s2714_s3 = smov 126   ;;  %v62_v24 = vcombine.high %v2852_v22, %v2852_v22  ;;  %vm128_vm4 = vcmask 254976   ;;  %s2720_s29 = smov 88   ;;  %vm1007_vm5 = vcmask 703488   ;;  %vm986_vm6 = vcmask 711680  }
   0x5   :  { %326 = vmatprep.subr.mxu0 %v142_v6  ;;  %2632 = vmatprep.subr.mxu1 %v4687_v3  ;;  %v444_v10 = vld [vmem:[%s4677_s4] sm:$0xff]  ;;  %s2715_s4 = smov 127   ;;  %v48_v15 = vunpack.c.0.s8 %v47_v13  ;;  %v530_v62 = vsub.s32 0, %v2838_v16  ;;  %v534_v63 = vsub.s32 2, %v2838_v16  ;;  %s2721_s30 = smov 106   ;;  %vm965_vm7 = vcmask 719872  }
   0x6   :  { %327 = vmatpush1.msra.mxu0 %v141_v7  ;;  %360 = vmatprep.mubr.f32.mxu0 %v4687_v3  ;;  %v2843_v17 = vld [vmem:[%s4678_s1] sm:$0xff]  ;;  %s2722_s13 = smov 107   ;;  %vm944_vm8 = vcmask 867328   ;;  %vm923_vm9 = vcmask 875520   ;;  %vm901_vm10 = vcmask 883712   ;;  %vm877_vm11 = vcmask 1031168  }
   0x7   :  { %2633 = vmatpush3.msra.mxu1 %v143_v8  ;;  %2634 = vmatprep.mubr.msk.f32.mxu1 %vm2711_vm1, %v4687_v3  ;;  %v51_v18 = vsub.s32 %v48_v15, %v2838_v16  ;;  %v45_v19 = vcombine.high %v2843_v17, %v2843_v17  ;;  %v531_v8 = vrot.slane %v2843_v17, %v530_v62  ;;  %vm853_vm12 = vcmask 1039360  }
   0x8   :  { %2600 = vmatmul.mubr.msk.f32.vlgmr.msra.gmra.mxu0 %vm150_vm0, %v136_v5  ;;  %2635 = vmatmul.mubr.msk.f32.vlgmr.msra.gmra.mxu1 %vm150_vm0, %v136_v5  ;;  %v547_v12 = vrot.slane %v2852_v22, %v530_v62  ;;  %vm1163_vm13 = vcmask 171008   ;;  %vm1290_vm14 = vcmask 588800  }
   0x9   :  { %2692 = vset.pattern.permute.xlu0 %v2712_v11  ;;  %2693 = vset.pattern.permute.xlu1 %v2712_v11  ;;  %v52_v20 = vrot.slane %v2843_v17, %v51_v18  ;;  %v59_v21 = vrot.slane %v45_v19, %v51_v18  ;;  %v69_v23 = vrot.slane %v2852_v22, %v51_v18  ;;  %v542_v11 = vsub.s32 6, %v2838_v16 }
   0xa   :  { %147 = vperm.xlu0 %2692, %v144_v9   ;;  %506 = vperm.xlu1 %2693, %v444_v10   ;;  %v76_v29 = vrot.slane %v62_v24, %v51_v18  ;;  %v538_v9 = vsub.s32 4, %v2838_v16  ;;  %v535_v10 = vrot.slane %v2843_v17, %v534_v63  ;;  %v2873_v18 = vsub.s32 1, %v2838_v16 }
   0xb   :  { %1358 = vmatprep.mubr.f32.mxu0 %v4687_v3  ;;  %1429 = vmatprep.mubr.f32.mxu1 %v4687_v3  ;;  %v60_v25 = vcombine.high %v52_v20, %v52_v20  ;;  %v61_v26 = vcombine.high %v59_v21, %v59_v21  ;;  %v86_v27 = vsel %vm85_vm3, %v52_v20, 0.0  ;;  %v100_v28 = vsel %vm85_vm3, %v59_v21, 0.0 }
   0xc   :  { %v77_v30 = vcombine.high %v69_v23, %v69_v23  ;;  %v114_v33 = vsel %vm85_vm3, %v69_v23, 0.0  ;;  %v87_v34 = vrot.slane %v86_v27, 4  ;;  %v101_v35 = vrot.slane %v100_v28, 4 }
   0xd   :  { %v93_v31 = vsel %vm85_vm3, %v60_v25, 0.0  ;;  %v107_v32 = vsel %vm85_vm3, %v61_v26, 0.0  ;;  %v129_v38 = vsel %vm128_vm4, %v76_v29, 0.0  ;;  %v115_v40 = vrot.slane %v114_v33, 4 }
   0xe   :  { %885 = vrot.lane.b32.xlu1 %v4687_v3, %s2713_s0  ;;  %v94_v36 = vrot.slane %v93_v31, 4  ;;  %v108_v37 = vrot.slane %v107_v32, 4  ;;  %v121_v39 = vsel %vm85_vm3, %v77_v30, 0.0  ;;  %v88_v41 = vadd.f32 %v87_v34, %v86_v27 }
   0xf   :  { %v130_v42 = vrot.slane %v129_v38, 4  ;;  %v122_v43 = vrot.slane %v121_v39, 4  ;;  %v102_v44 = vadd.f32 %v101_v35, %v100_v28  ;;  %v116_v47 = vadd.f32 %v115_v40, %v114_v33 }
  0x10   :  { %v95_v45 = vadd.f32 %v94_v36, %v93_v31  ;;  %v109_v46 = vadd.f32 %v108_v37, %v107_v32  ;;  %v89_v48 = vrot.slane %v88_v41, 2  ;;  %v661_v24 = vsub.s32 3, %v2838_v16 }
  0x11   :  { %v131_v49 = vadd.f32 %v130_v42, %v129_v38  ;;  %v123_v50 = vadd.f32 %v122_v43, %v121_v39  ;;  %v103_v51 = vrot.slane %v102_v44, 2  ;;  %v117_v54 = vrot.slane %v116_v47, 2 }
  0x12   :  { %861 = vrot.lane.b32.xlu1 %v4687_v3, %s2714_s3  ;;  %v96_v52 = vrot.slane %v95_v45, 2  ;;  %v110_v53 = vrot.slane %v109_v46, 2  ;;  %v90_v55 = vadd.f32 %v89_v48, %v88_v41  ;;  %v539_v26 = vrot.slane %v2843_v17, %v538_v9 }
  0x13   :  { %v132_v56 = vrot.slane %v131_v49, 2  ;;  %v124_v57 = vrot.slane %v123_v50, 2  ;;  %v104_v58 = vadd.f32 %v103_v51, %v102_v44  ;;  %v118_v61 = vadd.f32 %v117_v54, %v116_v47 }
  0x14   :  { %v97_v59 = vadd.f32 %v96_v52, %v95_v45  ;;  %v111_v60 = vadd.f32 %v110_v53, %v109_v46  ;;  %v91_v0 = vrot.slane %v90_v55, 1  ;;  %v555_v27 = vrot.slane %v2852_v22, %v538_v9 }
  0x15   :  { %v133_v1 = vadd.f32 %v132_v56, %v131_v49  ;;  %v125_v2 = vadd.f32 %v124_v57, %v123_v50  ;;  %v105_v4 = vrot.slane %v104_v58, 1  ;;  %v119_v7 = vrot.slane %v118_v61, 1 }
  0x16   :  { %837 = vrot.lane.b32.xlu1 %v4687_v3, %s2715_s4  ;;  %v98_v5 = vrot.slane %v97_v59, 1  ;;  %v112_v6 = vrot.slane %v111_v60, 1  ;;  %v2870_v13 = vadd.f32 %v91_v0, %v90_v55  ;;  %v2886_v28 = vrot.slane %v531_v8, %v530_v62 }
  0x17   :  { %v134_v14 = vrot.slane %v133_v1, 1  ;;  %v126_v15 = vrot.slane %v125_v2, 1  ;;  %v2875_v20 = vadd.f32 %v105_v4, %v104_v58  ;;  %v2882_v25 = vadd.f32 %v119_v7, %v118_v61 }
  0x18   :  { %4725 = vst [vmem:[#allocation3_spill] sm:$0xff] %v2870_v13  ;;  %v2877_v21 = vadd.f32 %v98_v5, %v97_v59  ;;  %v2879_v23 = vadd.f32 %v112_v6, %v111_v60  ;;  %v543_v31 = vrot.slane %v2843_v17, %v542_v11  ;;  %v551_v32 = vrot.slane %v2852_v22, %v534_v63 }
  0x19   :  { %4726 = vst [vmem:[#allocation4_spill] sm:$0xff] %v2875_v20  ;;  %4729 = vst [vmem:[#allocation7_spill] sm:$0xff] %v2882_v25  ;;  %v2890_v33 = vrot.slane %v535_v10, %v530_v62  ;;  %v2892_v34 = vrot.slane %v547_v12, %v530_v62  ;;  %v2894_v37 = vadd.f32 %v134_v14, %v133_v1  ;;  %v665_v43 = vsub.s32 5, %v2838_v16 }
  0x1a   :  { %4727 = vst [vmem:[#allocation5_spill] sm:$0xff] %v2877_v21  ;;  %4728 = vst [vmem:[#allocation6_spill] sm:$0xff] %v2879_v23  ;;  %v2896_v38 = vadd.f32 %v126_v15, %v125_v2  ;;  %v658_v41 = vrot.slane %v2843_v17, %v2873_v18  ;;  %v662_v42 = vrot.slane %v2843_v17, %v661_v24  ;;  %v669_v44 = vsub.s32 7, %v2838_v16 }
  0x1b   :  { %4730 = vst [vmem:[#allocation8_spill] sm:$0xff] %v2892_v34  ;;  %4731 = vst [vmem:[#allocation9_spill] sm:$0xff] %v2894_v37  ;;  %v2906_v48 = vrot.slane %v539_v26, %v530_v62  ;;  %v2908_v51 = vrot.slane %v543_v31, %v530_v62  ;;  %v2910_v52 = vrot.slane %v551_v32, %v530_v62 }
  0x1c   :  { %4732 = vst [vmem:[#allocation10_spill] sm:$0xff] %v2896_v38  ;;  %v2912_v53 = vrot.slane %v555_v27, %v530_v62  ;;  %v674_v54 = vrot.slane %v2852_v22, %v2873_v18  ;;  %v666_v60 = vrot.slane %v2843_v17, %v665_v43  ;;  %v670_v61 = vrot.slane %v2843_v17, %v669_v44 }
  0x1d   :  { %4734 = vst [vmem:[#allocation12_spill] sm:$0xff] %v2910_v52  ;;  %v2925_v62 = vrot.slane %v658_v41, %v2873_v18  ;;  %v2928_v63 = vrot.slane %v662_v42, %v2873_v18  ;;  %v678_v6 = vrot.slane %v2852_v22, %v661_v24  ;;  %v682_v7 = vrot.slane %v2852_v22, %v665_v43 }
  0x1e   :  { %4735 = vst [vmem:[#allocation13_spill] sm:$0xff] %v2912_v53  ;;  %v2954_v15 = vrot.slane %v666_v60, %v2873_v18  ;;  %v2964_v27 = vrot.slane %v674_v54, %v2873_v18  ;;  %v2969_v31 = vrot.slane %v670_v61, %v2873_v18 }
  0x20   :  { %4742 = vst [vmem:[#allocation20_spill] sm:$0xff] %v2964_v27  ;;  %4743 = vst [vmem:[#allocation21_spill] sm:$0xff] %v2969_v31 }
  0x85   :  { %v148_v19 = vpop.permute.xlu0 %147 }
  0xc4   :  { %v220_v29 = vpop.f32.mrf.mxu0  ;;  %v291_v30 = vpop.f32.mrf.mxu1 }
  0xc5   :  { %v221_v35 = vadd.f32 %v220_v29, %v148_v19  ;;  %v292_v36 = vadd.f32 %v291_v30, %v148_v19 }
  0xc6   :  { %v222_v39 = vpop.f32.mrf.mxu0  ;;  %v293_v40 = vpop.f32.mrf.mxu1 }
  0xc7   :  { %v2904_v45 = vmul.f32 %v221_v35, %v2870_v13  ;;  %v223_v46 = vadd.f32 %v222_v39, %v148_v19  ;;  %v294_v47 = vadd.f32 %v293_v40, %v148_v19  ;;  %v2917_v16 = vmul.f32 %v292_v36, %v2875_v20 }
  0xc8   :  { %v362_v49 = vpop.f32.mrf.mxu0  ;;  %v433_v50 = vpop.f32.mrf.mxu1  ;;  %v2978_v40 = vrot.slane %v678_v6, %v2873_v18 }
  0xc9   :  { %4733 = vst [vmem:[#allocation11_spill] sm:$0xff] %v2904_v45  ;;  %4736 = vst [vmem:[#allocation14_spill] sm:$0xff] %v2917_v16  ;;  %v2920_v55 = vmul.f32 %v223_v46, %v2877_v21  ;;  %v363_v56 = vadd.f32 %v362_v49, %v148_v19  ;;  %v434_v57 = vadd.f32 %v433_v50, %v148_v19 }
  0xca   :  { %v364_v58 = vpop.f32.mrf.mxu0  ;;  %v2636_v59 = vpop.f32.mrf.mxu1  ;;  %v2931_v0 = vmul.f32 %v294_v47, %v2879_v23  ;;  %v591_v2 = vmul.f32 %v2886_v28, %v2904_v45  ;;  %v446_v5 = vmul.f32 %v2904_v45, %v2870_v13  ;;  %v593_v10 = vmul.f32 %v2906_v48, %v2917_v16  ;;  %4744 = vst [vmem:[#allocation22_spill] sm:$0xff] %v2978_v40 }
  0xcb   :  { %4737 = vst [vmem:[#allocation15_spill] sm:$0xff] %v2920_v55  ;;  %v365_v1 = vadd.f32 %v364_v58, %v148_v19  ;;  %v592_v4 = vmul.f32 %v2890_v33, %v2920_v55  ;;  %v447_v17 = vmul.f32 %v2920_v55, %v2877_v21  ;;  %v2944_v8 = vmul.f32 %v363_v56, %v2882_v25 }
  0xcc   :  { %4738 = vst [vmem:[#allocation16_spill] sm:$0xff] %v2931_v0  ;;  %v2947_v9 = vmul.f32 %v434_v57, %v2894_v37  ;;  %v448_v12 = vmul.f32 %v2917_v16, %v2875_v20  ;;  %v719_v22 = vmul.f32 %v2928_v63, %v2920_v55  ;;  %v594_v24 = vmul.f32 %v2908_v51, %v2931_v0 }
  0xcd   :  { %4739 = vst [vmem:[#allocation17_spill] sm:$0xff] %v2944_v8  ;;  %v598_v11 = vadd.f32 %v592_v4, %v591_v2  ;;  %v453_v14 = vadd.f32 %v447_v17, %v446_v5  ;;  %v2959_v19 = vmul.f32 %v365_v1, %v2896_v38  ;;  %v449_v29 = vmul.f32 %v2931_v0, %v2879_v23 }
  0xce   :  { %4740 = vst [vmem:[#allocation18_spill] sm:$0xff] %v2947_v9  ;;  %v718_v32 = vmul.f32 %v2925_v62, %v2904_v45  ;;  %v595_v35 = vmul.f32 %v2892_v34, %v2944_v8  ;;  %v597_v36 = vmul.f32 %v2912_v53, %v2947_v9  ;;  %v450_v41 = vmul.f32 %v2944_v8, %v2882_v25 }
  0xcf   :  { %4741 = vst [vmem:[#allocation19_spill] sm:$0xff] %v2959_v19  ;;  %v599_v26 = vadd.f32 %v598_v11, %v593_v10  ;;  %v454_v30 = vadd.f32 %v453_v14, %v448_v12  ;;  %v720_v43 = vmul.f32 %v2954_v15, %v2917_v16  ;;  %v596_v46 = vmul.f32 %v2910_v52, %v2959_v19  ;;  %v445_v14 = vld [vmem:[%s4679_s5] sm:$0xff]  ;;  %s2717_s5 = smov 21  }
  0xd0   :  { %v725_v44 = vadd.f32 %v719_v22, %v718_v32  ;;  %v452_v49 = vmul.f32 %v2947_v9, %v2894_v37  ;;  %v2989_v50 = vrot.slane %v682_v7, %v2873_v18  ;;  %v451_v54 = vmul.f32 %v2959_v19, %v2896_v38  ;;  %v3007_v22 = vpop.permute.xlu1 %506 }
  0xd1   :  { %v600_v39 = vadd.f32 %v599_v26, %v594_v24  ;;  %v455_v42 = vadd.f32 %v454_v30, %v449_v29  ;;  %v721_v57 = vmul.f32 %v2969_v31, %v2931_v0  ;;  %v603_v60 = vsel %vm458_vm2, %v597_v36, 0.0 }
  0xd2   :  { %4745 = vst [vmem:[#allocation23_spill] sm:$0xff] %v2989_v50  ;;  %v726_v58 = vadd.f32 %v725_v44, %v720_v43  ;;  %v722_v1 = vmul.f32 %v2964_v27, %v2944_v8  ;;  %v459_v18 = vsel %vm458_vm2, %v452_v49, 0.0  ;;  %v724_v5 = vmul.f32 %v2989_v50, %v2947_v9 }
  0xd3   :  { %v601_v47 = vadd.f32 %v600_v39, %v595_v35  ;;  %v456_v56 = vadd.f32 %v455_v42, %v450_v41  ;;  %v723_v6 = vmul.f32 %v2978_v40, %v2959_v19 }
  0xd4   :  { %v727_v2 = vadd.f32 %v726_v58, %v721_v57  ;;  %v730_v11 = vsel %vm458_vm2, %v724_v5, 0.0  ;;  %v3009_v24 = vpop.permute.xlu1 %885 }
  0xd5   :  { %v602_v59 = vadd.f32 %v601_v47, %v596_v46  ;;  %v457_v61 = vadd.f32 %v456_v56, %v451_v54 }
  0xd6   :  { %v728_v7 = vadd.f32 %v727_v2, %v722_v1 }
  0xd7   :  { %v604_v4 = vadd.f32 %v603_v60, %v602_v59  ;;  %v460_v17 = vadd.f32 %v459_v18, %v457_v61 }
  0xd8   :  { %v729_v10 = vadd.f32 %v728_v7, %v723_v6  ;;  %v3011_v26 = vpop.permute.xlu1 %861 }
  0xd9   :  { %605 = vadd.xlane.f32.xlu1 %v604_v4  ;;  %461 = vadd.xlane.f32.xlu0 %v460_v17 }
  0xda   :  { %v731_v12 = vadd.f32 %v730_v11, %v729_v10 }
  0xdc   :  { %v3013_v29 = vpop.permute.xlu1 %837 }
  0xdd   :  { %732 = vadd.xlane.f32.xlu1 %v731_v12 }
  0xef   :  { %518 = vperm.xlu0 %2692, %v445_v14  }
 0x162   :  { %v606_v30 = vpop.xlane.xlu1 %605  ;;  %v462_v35 = vpop.xlane.xlu0 %461 }
 0x163   :  { %v607_v32 = vmul.f32 0.0030864198, %v606_v30  ;;  %v463_v36 = vmul.f32 0.0015432099, %v462_v35 }
 0x165   :  { %v3016_v39 = vsub.f32 %v2904_v45, %v463_v36  ;;  %v3019_v41 = vsub.f32 %v2920_v55, %v463_v36  ;;  %v3022_v42 = vsub.f32 %v2917_v16, %v463_v36  ;;  %v3025_v43 = vsub.f32 %v2931_v0, %v463_v36 }
 0x166   :  { %v3028_v44 = vsub.f32 %v2944_v8, %v463_v36  ;;  %v3031_v46 = vsub.f32 %v2959_v19, %v463_v36  ;;  %v3034_v47 = vsub.f32 %v2947_v9, %v463_v36  ;;  %v608_v49 = vsub.f32 %v2904_v45, %v607_v32  ;;  %v733_v54 = vpop.xlane.xlu1 %732 }
 0x167   :  { %v471_v56 = vmul.f32 %v3016_v39, %v2870_v13  ;;  %v472_v57 = vmul.f32 %v3019_v41, %v2877_v21  ;;  %v473_v58 = vmul.f32 %v3022_v42, %v2875_v20  ;;  %v609_v59 = vsub.f32 %v2920_v55, %v607_v32 }
 0x168   :  { %v610_v60 = vsub.f32 %v2917_v16, %v607_v32  ;;  %v611_v61 = vsub.f32 %v2931_v0, %v607_v32  ;;  %v612_v1 = vsub.f32 %v2944_v8, %v607_v32  ;;  %v474_v2 = vmul.f32 %v3025_v43, %v2879_v23 }
 0x169   :  { %v477_v4 = vmul.f32 %v3034_v47, %v2894_v37  ;;  %v478_v18 = vmul.f32 %v471_v56, %v471_v56  ;;  %v479_v5 = vmul.f32 %v472_v57, %v472_v57  ;;  %v734_v17 = vmul.f32 0.0030864198, %v733_v54 }
 0x16a   :  { %v475_v6 = vmul.f32 %v3028_v44, %v2882_v25  ;;  %v476_v7 = vmul.f32 %v3031_v46, %v2896_v38  ;;  %v480_v10 = vmul.f32 %v473_v58, %v473_v58  ;;  %v614_v12 = vsub.f32 %v2947_v9, %v607_v32 }
 0x16b   :  { %v485_v11 = vadd.f32 %v479_v5, %v478_v18  ;;  %v3057_v14 = vmul.f32 %v608_v49, %v2886_v28  ;;  %v3060_v30 = vmul.f32 %v609_v59, %v2890_v33  ;;  %v613_v35 = vsub.f32 %v2959_v19, %v607_v32 }
 0x16c   :  { %v3064_v36 = vmul.f32 %v610_v60, %v2906_v48  ;;  %v481_v54 = vmul.f32 %v474_v2, %v474_v2  ;;  %v484_v56 = vmul.f32 %v477_v4, %v477_v4  ;;  %v482_v18 = vmul.f32 %v475_v6, %v475_v6 }
 0x16d   :  { %v486_v57 = vadd.f32 %v485_v11, %v480_v10  ;;  %v622_v58 = vmul.f32 %v3057_v14, %v3057_v14  ;;  %v483_v5 = vmul.f32 %v476_v7, %v476_v7  ;;  %v3069_v3 = vmul.f32 %v611_v61, %v2908_v51 }
 0x16e   :  { %v623_v49 = vmul.f32 %v3060_v30, %v3060_v30  ;;  %v3074_v32 = vmul.f32 %v612_v1, %v2892_v34  ;;  %v3077_v60 = vmul.f32 %v614_v12, %v2912_v53  ;;  %v735_v2 = vsub.f32 %v2904_v45, %v734_v17 }
 0x16f   :  { %v487_v59 = vadd.f32 %v486_v57, %v481_v54  ;;  %v624_v4 = vmul.f32 %v3064_v36, %v3064_v36  ;;  %v736_v7 = vsub.f32 %v2920_v55, %v734_v17  ;;  %v737_v61 = vsub.f32 %v2917_v16, %v734_v17 }
 0x170   :  { %v629_v6 = vadd.f32 %v623_v49, %v622_v58  ;;  %v490_v11 = vsel %vm458_vm2, %v484_v56, 0.0  ;;  %v3086_v54 = vmul.f32 %v613_v35, %v2910_v52  ;;  %v738_v1 = vsub.f32 %v2931_v0, %v734_v17 }
 0x171   :  { %v488_v10 = vadd.f32 %v487_v59, %v482_v18  ;;  %v625_v12 = vmul.f32 %v3069_v3, %v3069_v3  ;;  %v3092_v45 = vmul.f32 %v735_v2, %v2925_v62  ;;  %v3095_v58 = vmul.f32 %v736_v7, %v2928_v63 }
 0x172   :  { %v630_v57 = vadd.f32 %v629_v6, %v624_v4  ;;  %v626_v18 = vmul.f32 %v3074_v32, %v3074_v32  ;;  %v739_v56 = vsub.f32 %v2944_v8, %v734_v17  ;;  %v3101_v35 = vmul.f32 %v737_v61, %v2954_v15 }
 0x173   :  { %v489_v49 = vadd.f32 %v488_v10, %v483_v5  ;;  %v628_v59 = vmul.f32 %v3077_v60, %v3077_v60  ;;  %v741_v4 = vsub.f32 %v2947_v9, %v734_v17  ;;  %v749_v2 = vmul.f32 %v3092_v45, %v3092_v45 }
 0x174   :  { %v631_v0 = vadd.f32 %v630_v57, %v625_v12  ;;  %v740_v5 = vsub.f32 %v2959_v19, %v734_v17  ;;  %v3110_v7 = vmul.f32 %v738_v1, %v2969_v31  ;;  %v750_v10 = vmul.f32 %v3095_v58, %v3095_v58 }
 0x175   :  { %v491_v6 = vadd.f32 %v490_v11, %v489_v49  ;;  %v627_v61 = vmul.f32 %v3086_v54, %v3086_v54  ;;  %v746_v12 = vmul.f32 %v739_v56, %v2964_v27  ;;  %v751_v57 = vmul.f32 %v3101_v35, %v3101_v35 }
 0x176   :  { %v632_v8 = vadd.f32 %v631_v0, %v626_v18  ;;  %v756_v9 = vadd.f32 %v750_v10, %v749_v2  ;;  %v3120_v17 = vmul.f32 %v741_v4, %v2989_v50  ;;  %v634_v1 = vsel %vm458_vm2, %v628_v59, 0.0 }
 0x177   :  { %492 = vadd.xlane.f32.xlu1 %v491_v6  ;;  %v747_v49 = vmul.f32 %v740_v5, %v2978_v40  ;;  %v752_v19 = vmul.f32 %v3110_v7, %v3110_v7  ;;  %v753_v18 = vmul.f32 %v746_v12, %v746_v12  ;;  %v4746_v59 = vmov 0.0  }
 0x178   :  { %v633_v11 = vadd.f32 %v632_v8, %v627_v61  ;;  %v757_v16 = vadd.f32 %v756_v9, %v751_v57  ;;  %v755_v56 = vmul.f32 %v3120_v17, %v3120_v17  ;;  %1019 = vrot.lane.b32.xlu0 %v4746_v59, %s2717_s5 }
 0x179   :  { %v754_v2 = vmul.f32 %v747_v49, %v747_v49 }
 0x17a   :  { %v635_v0 = vadd.f32 %v634_v1, %v633_v11  ;;  %v758_v6 = vadd.f32 %v757_v16, %v752_v19  ;;  %v761_v4 = vsel %vm458_vm2, %v755_v56, 0.0 }
 0x17c   :  { %636 = vadd.xlane.f32.xlu1 %v635_v0  ;;  %v759_v8 = vadd.f32 %v758_v6, %v753_v18 }
 0x17e   :  { %v760_v10 = vadd.f32 %v759_v8, %v754_v2 }
 0x180   :  { %v762_v61 = vadd.f32 %v761_v4, %v760_v10 }
 0x182   :  { %763 = vadd.xlane.f32.xlu1 %v762_v61 }
 0x200   :  { %v493_v5 = vpop.xlane.xlu1 %492 }
 0x201   :  { %v494_v9 = vmul.f32 0.0015432099, %v493_v5 }
 0x203   :  { %v495_v57 = vadd.f32 1e-05, %v494_v9 }
 0x205   :  { %2696 = vrsqrt.f32 %v495_v57  ;;  %v637_v16 = vpop.xlane.xlu1 %636 }
 0x206   :  { %v638_v19 = vmul.f32 0.0030864198, %v637_v16 }
 0x208   :  { %v639_v11 = vadd.f32 1e-05, %v638_v19 }
 0x20a   :  { %2698 = vrsqrt.f32 %v639_v11 }
 0x20b   :  { %v764_v1 = vpop.xlane.xlu1 %763 }
 0x20c   :  { %v765_v0 = vmul.f32 0.0030864198, %v764_v1 }
 0x20e   :  { %v766_v18 = vadd.f32 1e-05, %v765_v0 }
 0x210   :  { %2700 = vrsqrt.f32 %v766_v18 }
 0x212   :  { %v2697_v6 = vpop.eup %2696 }
 0x213   :  { %v499_v56 = vmul.f32 %v2697_v6, %v3022_v42  ;;  %v497_v2 = vmul.f32 %v2697_v6, %v3016_v39  ;;  %v501_v8 = vmul.f32 %v2697_v6, %v3028_v44  ;;  %v498_v10 = vmul.f32 %v2697_v6, %v3019_v41  ;;  %v519_v39 = vpop.permute.xlu0 %518 }
 0x214   :  { %v502_v4 = vmul.f32 %v2697_v6, %v3031_v46  ;;  %v503_v5 = vmul.f32 %v2697_v6, %v3034_v47  ;;  %v500_v44 = vmul.f32 %v2697_v6, %v3025_v43 }
 0x215   :  { %v511_v61 = vmul.f32 %v3007_v22, %v499_v56  ;;  %v509_v9 = vmul.f32 %v3007_v22, %v497_v2  ;;  %v513_v57 = vmul.f32 %v3007_v22, %v501_v8  ;;  %v510_v16 = vmul.f32 %v3007_v22, %v498_v10 }
 0x216   :  { %v514_v42 = vmul.f32 %v3007_v22, %v502_v4  ;;  %v515_v41 = vmul.f32 %v3007_v22, %v503_v5 }
 0x217   :  { %v2699_v19 = vpop.eup %2698  ;;  %v523_v11 = vadd.f32 %v519_v39, %v511_v61  ;;  %v521_v1 = vadd.f32 %v519_v39, %v509_v9  ;;  %v525_v0 = vadd.f32 %v519_v39, %v513_v57  ;;  %v522_v47 = vadd.f32 %v519_v39, %v510_v16 }
 0x218   :  { %v643_v46 = vmul.f32 %v2699_v19, %v3064_v36  ;;  %v641_v56 = vmul.f32 %v2699_v19, %v3057_v14  ;;  %v645_v2 = vmul.f32 %v2699_v19, %v3074_v32  ;;  %v642_v8 = vmul.f32 %v2699_v19, %v3060_v30 }
 0x219   :  { %v526_v10 = vadd.f32 %v519_v39, %v514_v42  ;;  %v646_v36 = vmul.f32 %v2699_v19, %v3086_v54  ;;  %v647_v9 = vmul.f32 %v2699_v19, %v3077_v60  ;;  %v644_v54 = vmul.f32 %v2699_v19, %v3069_v3 }
 0x21d   :  { %v2701_v18 = vpop.eup %2700 }
 0x21e   :  { %v770_v4 = vmul.f32 %v2701_v18, %v3101_v35  ;;  %v768_v61 = vmul.f32 %v2701_v18, %v3092_v45  ;;  %v772_v43 = vmul.f32 %v2701_v18, %v746_v12  ;;  %v769_v6 = vmul.f32 %v2701_v18, %v3095_v58 }
 0x21f   :  { %v773_v5 = vmul.f32 %v2701_v18, %v747_v49  ;;  %v774_v57 = vmul.f32 %v2701_v18, %v3120_v17  ;;  %v771_v30 = vmul.f32 %v2701_v18, %v3110_v7  ;;  %v527_v35 = vadd.f32 %v519_v39, %v515_v41 }
 0x220   :  { %v777_v14 = vadd.f32 %v770_v4, %v643_v46  ;;  %v775_v16 = vadd.f32 %v768_v61, %v641_v56  ;;  %v779_v32 = vadd.f32 %v772_v43, %v645_v2  ;;  %v776_v55 = vadd.f32 %v769_v6, %v642_v8 }
 0x221   :  { %v780_v42 = vadd.f32 %v773_v5, %v646_v36  ;;  %v781_v40 = vadd.f32 %v774_v57, %v647_v9  ;;  %v512_v46 = vmul.f32 %v3007_v22, %v500_v44  ;;  %v778_v56 = vadd.f32 %v771_v30, %v644_v54 }
 0x222   :  { %v784_v45 = vadd.f32 %v777_v14, %v523_v11  ;;  %v782_v12 = vadd.f32 %v775_v16, %v521_v1  ;;  %v786_v50 = vadd.f32 %v779_v32, %v525_v0  ;;  %v783_v58 = vadd.f32 %v776_v55, %v522_v47  ;;  %v3275_v0 = vpop.permute.xlu0 %1019 }
 0x223   :  { %v3156_v49 = vadd.f32 %v780_v42, %v526_v10  ;;  %v788_v60 = vadd.f32 %v781_v40, %v527_v35  ;;  %v524_v3 = vadd.f32 %v519_v39, %v512_v46 }
 0x224   :  { %v791_v53 = vmax.f32 %v784_v45, 0.0  ;;  %v789_v17 = vmax.f32 %v782_v12, 0.0  ;;  %v793_v11 = vmax.f32 %v786_v50, 0.0  ;;  %v790_v1 = vmax.f32 %v783_v58, 0.0 }
 0x225   :  { %v795_v2 = vmax.f32 %v788_v60, 0.0  ;;  %v785_v50 = vadd.f32 %v778_v56, %v524_v3 }
 0x226   :  { %v3160_v7 = vmul.f32 %v791_v53, %v2875_v20  ;;  %v3163_v41 = vmul.f32 %v789_v17, %v2870_v13  ;;  %v3172_v53 = vmul.f32 %v793_v11, %v2882_v25  ;;  %v3175_v40 = vmul.f32 %v790_v1, %v2877_v21 }
 0x227   :  { %v802_v55 = vmul.f32 %v795_v2, %v2894_v37  ;;  %v792_v22 = vmax.f32 %v785_v50, 0.0 }
 0x228   :  { %976 = vrot.lane.b32.xlu0 %v3160_v7, %s2718_s27  ;;  %993 = vrot.lane.b32.xlu1 %v3163_v41, %s2719_s28 }
 0x229   :  { %820 = vst.msk [vmem:[#allocation2 + $0x38] sm:$0xff] %vm458_vm2, %v802_v55  ;;  %v799_v39 = vmul.f32 %v792_v22, %v2879_v23 }
 0x22c   :  { %1001 = vrot.lane.b32.xlu0 %v3172_v53, %s2719_s28  ;;  %995 = vrot.lane.b32.xlu1 %v3175_v40, %s2719_s28 }
 0x230   :  { %953 = vrot.lane.b32.xlu0 %v3175_v40, %s2720_s29  ;;  %997 = vrot.lane.b32.xlu1 %v3160_v7, %s2719_s28  ;;  %v3185_v19 = vld [vmem:[#allocation2 + $0x38] sm:$0xff] }
 0x231   :  { %1818 = vst [vmem:[#allocation2 + $0x38] sm:$0xff] %v4746_v59  ;;  %v794_v59 = vmax.f32 %v3156_v49, 0.0 }
 0x233   :  { %v801_v44 = vmul.f32 %v794_v59, %v2896_v38 }
 0x234   :  { %978 = vrot.lane.b32.xlu0 %v799_v39, %s2718_s27  ;;  %972 = vrot.lane.b32.xlu1 %v3163_v41, %s2718_s27 }
 0x238   :  { %930 = vrot.lane.b32.xlu0 %v3163_v41, %s2721_s30  ;;  %974 = vrot.lane.b32.xlu1 %v3175_v40, %s2718_s27 }
 0x23c   :  { %934 = vrot.lane.b32.xlu0 %v3160_v7, %s2721_s30  ;;  %999 = vrot.lane.b32.xlu1 %v799_v39, %s2719_s28 }
 0x240   :  { %959 = vrot.lane.b32.xlu0 %v3172_v53, %s2720_s29  ;;  %951 = vrot.lane.b32.xlu1 %v3163_v41, %s2720_s29 }
 0x244   :  { %911 = vrot.lane.b32.xlu0 %v3175_v40, %s2722_s13  ;;  %955 = vrot.lane.b32.xlu1 %v3160_v7, %s2720_s29 }
 0x248   :  { %936 = vrot.lane.b32.xlu0 %v799_v39, %s2721_s30  ;;  %980 = vrot.lane.b32.xlu1 %v3172_v53, %s2718_s27 }
 0x24c   :  { %887 = vrot.lane.b32.xlu0 %v3163_v41, %s2713_s0  ;;  %932 = vrot.lane.b32.xlu1 %v3175_v40, %s2721_s30 }
 0x250   :  { %891 = vrot.lane.b32.xlu0 %v3160_v7, %s2713_s0  ;;  %957 = vrot.lane.b32.xlu1 %v799_v39, %s2720_s29 }
 0x254   :  { %915 = vrot.lane.b32.xlu0 %v799_v39, %s2722_s13  ;;  %909 = vrot.lane.b32.xlu1 %v3163_v41, %s2722_s13 }
 0x258   :  { %863 = vrot.lane.b32.xlu0 %v3163_v41, %s2714_s3  ;;  %913 = vrot.lane.b32.xlu1 %v3160_v7, %s2722_s13 }
 0x25c   :  { %867 = vrot.lane.b32.xlu0 %v3160_v7, %s2714_s3  ;;  %938 = vrot.lane.b32.xlu1 %v3172_v53, %s2721_s30 }
 0x260   :  { %893 = vrot.lane.b32.xlu0 %v799_v39, %s2713_s0  ;;  %889 = vrot.lane.b32.xlu1 %v3175_v40, %s2713_s0 }
 0x264   :  { %839 = vrot.lane.b32.xlu0 %v3163_v41, %s2715_s4  ;;  %917 = vrot.lane.b32.xlu1 %v3172_v53, %s2722_s13 }
 0x268   :  { %843 = vrot.lane.b32.xlu0 %v3160_v7, %s2715_s4  ;;  %865 = vrot.lane.b32.xlu1 %v3175_v40, %s2714_s3 }
 0x26c   :  { %869 = vrot.lane.b32.xlu0 %v799_v39, %s2714_s3  ;;  %895 = vrot.lane.b32.xlu1 %v3172_v53, %s2713_s0 }
 0x270   :  { %845 = vrot.lane.b32.xlu0 %v799_v39, %s2715_s4  ;;  %841 = vrot.lane.b32.xlu1 %v3175_v40, %s2715_s4 }
 0x274   :  { %1003 = vrot.lane.b32.xlu0 %v801_v44, %s2719_s28  ;;  %871 = vrot.lane.b32.xlu1 %v3172_v53, %s2714_s3 }
 0x278   :  { %982 = vrot.lane.b32.xlu0 %v801_v44, %s2718_s27  ;;  %847 = vrot.lane.b32.xlu1 %v3172_v53, %s2715_s4 }
 0x27c   :  { %961 = vrot.lane.b32.xlu0 %v801_v44, %s2720_s29  ;;  %1005 = vrot.lane.b32.xlu1 %v3185_v19, %s2719_s28 }
 0x280   :  { %940 = vrot.lane.b32.xlu0 %v801_v44, %s2721_s30  ;;  %984 = vrot.lane.b32.xlu1 %v3185_v19, %s2718_s27 }
 0x284   :  { %919 = vrot.lane.b32.xlu0 %v801_v44, %s2722_s13  ;;  %963 = vrot.lane.b32.xlu1 %v3185_v19, %s2720_s29 }
 0x288   :  { %897 = vrot.lane.b32.xlu0 %v801_v44, %s2713_s0  ;;  %942 = vrot.lane.b32.xlu1 %v3185_v19, %s2721_s30 }
 0x28c   :  { %873 = vrot.lane.b32.xlu0 %v801_v44, %s2714_s3  ;;  %921 = vrot.lane.b32.xlu1 %v3185_v19, %s2722_s13 }
 0x290   :  { %849 = vrot.lane.b32.xlu0 %v801_v44, %s2715_s4  ;;  %899 = vrot.lane.b32.xlu1 %v3185_v19, %s2713_s0 }
 0x294   :  { %1021 = vrot.lane.b32.xlu0 %v3163_v41, %s2717_s5  ;;  %875 = vrot.lane.b32.xlu1 %v3185_v19, %s2714_s3 }
 0x298   :  { %1027 = vrot.lane.b32.xlu0 %v799_v39, %s2717_s5  ;;  %851 = vrot.lane.b32.xlu1 %v3185_v19, %s2715_s4 }
 0x29a   :  { %v994_v47 = vpop.permute.xlu1 %993  ;;  %v3280_v18 = vpop.permute.xlu0 %976 }
 0x29c   :  { %1031 = vrot.lane.b32.xlu0 %v801_v44, %s2717_s5  ;;  %1023 = vrot.lane.b32.xlu1 %v3175_v40, %s2717_s5 }
 0x29e   :  { %v996_v8 = vpop.permute.xlu1 %995  ;;  %v3285_v10 = vpop.permute.xlu0 %1001 }
 0x29f   :  { %v1008_v52 = vsel %vm1007_vm5, %v994_v47, %v996_v8 }
 0x2a0   :  { %1025 = vrot.lane.b32.xlu1 %v3160_v7, %s2717_s5  ;;  %1147 = vrot.lane.b32.xlu0 %v994_v47, %s2717_s5 }
 0x2a2   :  { %v3290_v4 = vpop.permute.xlu1 %997  ;;  %v3292_v61 = vpop.permute.xlu0 %953 }
 0x2a3   :  { %v1009_v38 = vsel %vm1007_vm5, %v996_v8, %v3290_v4 }
 0x2a4   :  { %1029 = vrot.lane.b32.xlu1 %v3172_v53, %s2717_s5 }
 0x2a6   :  { %v973_v43 = vpop.permute.xlu1 %972  ;;  %v3296_v6 = vpop.permute.xlu0 %978 }
 0x2a8   :  { %1131 = vrot.lane.b32.xlu1 %v973_v43, %s2717_s5 }
 0x2aa   :  { %v975_v36 = vpop.permute.xlu1 %974  ;;  %v3299_v5 = vpop.permute.xlu0 %930 }
 0x2ab   :  { %v987_v27 = vsel %vm986_vm6, %v973_v43, %v975_v36  ;;  %v988_v34 = vsel %vm986_vm6, %v975_v36, %v3280_v18 }
 0x2ac   :  { %1099 = vrot.lane.b32.xlu1 %v3299_v5, %s2717_s5 }
 0x2ae   :  { %v1000_v9 = vpop.permute.xlu1 %999  ;;  %v3318_v45 = vpop.permute.xlu0 %934 }
 0x2af   :  { %v1011_v31 = vsel %vm1007_vm5, %v1000_v9, %v3285_v10  ;;  %v1010_v47 = vsel %vm1007_vm5, %v3290_v4, %v1000_v9 }
 0x2b2   :  { %v952_v57 = vpop.permute.xlu1 %951  ;;  %v3322_v58 = vpop.permute.xlu0 %959 }
 0x2b3   :  { %1115 = vrot.lane.b32.xlu0 %v952_v57, %s2717_s5 }
 0x2b6   :  { %v3304_v14 = vpop.permute.xlu1 %955  ;;  %v3328_v60 = vpop.permute.xlu0 %911 }
 0x2ba   :  { %v3306_v16 = vpop.permute.xlu1 %980  ;;  %v3332_v46 = vpop.permute.xlu0 %936 }
 0x2bb   :  { %v990_v8 = vsel %vm986_vm6, %v3296_v6, %v3306_v16 }
 0x2be   :  { %v3308_v32 = vpop.permute.xlu1 %932  ;;  %v3338_v7 = vpop.permute.xlu0 %887 }
 0x2bf   :  { %v945_v4 = vsel %vm944_vm8, %v3299_v5, %v3308_v32 }
 0x2c2   :  { %v3310_v30 = vpop.permute.xlu1 %957  ;;  %v3342_v11 = vpop.permute.xlu0 %891 }
 0x2c3   :  { %v969_v43 = vsel %vm965_vm7, %v3310_v30, %v3322_v58 }
 0x2c6   :  { %v3312_v42 = vpop.permute.xlu1 %909  ;;  %v3348_v3 = vpop.permute.xlu0 %915 }
 0x2c7   :  { %1083 = vrot.lane.b32.xlu0 %v3312_v42, %s2717_s5  ;;  %v924_v9 = vsel %vm923_vm9, %v3312_v42, %v3328_v60  ;;  %v902_v42 = vsel %vm901_vm10, %v3009_v24, %v3338_v7 }
 0x2ca   :  { %v3316_v35 = vpop.permute.xlu1 %913  ;;  %v3356_v40 = vpop.permute.xlu0 %863 }
 0x2cb   :  { %v925_v36 = vsel %vm923_vm9, %v3328_v60, %v3316_v35 }
 0x2ce   :  { %v3320_v12 = vpop.permute.xlu1 %938  ;;  %v3364_v39 = vpop.permute.xlu0 %867 }
 0x2d2   :  { %v3324_v54 = vpop.permute.xlu1 %889  ;;  %v3372_v44 = vpop.permute.xlu0 %893 }
 0x2d6   :  { %v3326_v49 = vpop.permute.xlu1 %917  ;;  %v3383_v25 = vpop.permute.xlu0 %839 }
 0x2da   :  { %v3330_v17 = vpop.permute.xlu1 %865 }
 0x2de   :  { %v3334_v56 = vpop.permute.xlu1 %895 }
 0x2e2   :  { %v3336_v2 = vpop.permute.xlu1 %841 }
 0x2e6   :  { %v3340_v41 = vpop.permute.xlu1 %871 }
 0x2ea   :  { %v3344_v1 = vpop.permute.xlu1 %847 }
 0x2ee   :  { %v3346_v55 = vpop.permute.xlu1 %1005 }
 0x2ef   :  { %1161 = vrot.lane.b32.xlu1 %v3346_v55, %s2717_s5 }
 0x2f2   :  { %v3352_v53 = vpop.permute.xlu1 %984 }
 0x2f3   :  { %1145 = vrot.lane.b32.xlu0 %v3352_v53, %s2717_s5 }
 0x2f6   :  { %v3358_v50 = vpop.permute.xlu1 %963 }
 0x2f7   :  { %1129 = vrot.lane.b32.xlu1 %v3358_v50, %s2717_s5 }
 0x2fa   :  { %v3362_v22 = vpop.permute.xlu1 %942 }
 0x2fb   :  { %1113 = vrot.lane.b32.xlu0 %v3362_v22, %s2717_s5 }
 0x2fe   :  { %v3368_v59 = vpop.permute.xlu1 %921 }
 0x2ff   :  { %1097 = vrot.lane.b32.xlu1 %v3368_v59, %s2717_s5 }
 0x302   :  { %v3374_v37 = vpop.permute.xlu1 %899 }
 0x303   :  { %1081 = vrot.lane.b32.xlu0 %v3374_v37, %s2717_s5  ;;  %1151 = vrot.lane.b32.xlu1 %v1009_v38, %s2717_s5  ;;  %v3393_v38 = vpop.permute.xlu0 %843 }
 0x307   :  { %1149 = vrot.lane.b32.xlu0 %v1008_v52, %s2717_s5  ;;  %1133 = vrot.lane.b32.xlu1 %v987_v27, %s2717_s5  ;;  %v967_v52 = vsel %vm965_vm7, %v3292_v61, %v3304_v14  ;;  %v966_v27 = vsel %vm965_vm7, %v952_v57, %v3292_v61  ;;  %v947_v57 = vsel %vm944_vm8, %v3318_v45, %v3332_v46 }
 0x30b   :  { %1135 = vrot.lane.b32.xlu0 %v988_v34, %s2717_s5  ;;  %1155 = vrot.lane.b32.xlu1 %v1011_v31, %s2717_s5  ;;  %v989_v34 = vsel %vm986_vm6, %v3280_v18, %v3296_v6  ;;  %v870_v31 = vpop.permute.xlu0 %869  ;;  %v946_v18 = vsel %vm944_vm8, %v3308_v32, %v3318_v45  ;;  %v968_v6 = vsel %vm965_vm7, %v3304_v14, %v3310_v30 }
 0x30c   :  { %v948_v32 = vsel %vm944_vm8, %v3332_v46, %v3320_v12  ;;  %v903_v30 = vsel %vm901_vm10, %v3338_v7, %v3324_v54  ;;  %v904_v45 = vsel %vm901_vm10, %v3324_v54, %v3342_v11  ;;  %v927_v46 = vsel %vm923_vm9, %v3348_v3, %v3326_v49 }
 0x30d   :  { %v879_v54 = vsel %vm877_vm11, %v3356_v40, %v3330_v17  ;;  %v880_v7 = vsel %vm877_vm11, %v3330_v17, %v3364_v39  ;;  %v906_v17 = vsel %vm901_vm10, %v3372_v44, %v3334_v56 }
 0x30f   :  { %1153 = vrot.lane.b32.xlu0 %v1010_v47, %s2717_s5  ;;  %1119 = vrot.lane.b32.xlu1 %v967_v52, %s2717_s5  ;;  %v846_v61 = vpop.permute.xlu0 %845  ;;  %v926_v47 = vsel %vm923_vm9, %v3316_v35, %v3348_v3  ;;  %v878_v35 = vsel %vm877_vm11, %v3011_v26, %v3356_v40  ;;  %v905_v3 = vsel %vm901_vm10, %v3342_v11, %v3372_v44  ;;  %v876_v44 = vpop.permute.xlu1 %875 }
 0x310   :  { %v854_v11 = vsel %vm853_vm12, %v3013_v29, %v3383_v25  ;;  %v856_v40 = vsel %vm853_vm12, %v3336_v2, %v3393_v38  ;;  %v857_v29 = vsel %vm853_vm12, %v3393_v38, %v846_v61 }
 0x313   :  { %1117 = vrot.lane.b32.xlu0 %v966_v27, %s2717_s5  ;;  %1137 = vrot.lane.b32.xlu1 %v989_v34, %s2717_s5  ;;  %v1004_v5 = vpop.permute.xlu0 %1003  ;;  %v855_v27 = vsel %vm853_vm12, %v3383_v25, %v3336_v2  ;;  %v882_v34 = vsel %vm877_vm11, %v870_v31, %v3340_v41  ;;  %v858_v25 = vsel %vm853_vm12, %v846_v61, %v3344_v1  ;;  %v852_v2 = vpop.permute.xlu1 %851 }
 0x317   :  { %1139 = vrot.lane.b32.xlu0 %v990_v8, %s2717_s5  ;;  %1101 = vrot.lane.b32.xlu1 %v945_v4, %s2717_s5  ;;  %v983_v14 = vpop.permute.xlu0 %982  ;;  %v881_v8 = vsel %vm877_vm11, %v3364_v39, %v870_v31  ;;  %v1013_v39 = vsel %vm1007_vm5, %v1004_v5, %v3346_v55  ;;  %v1012_v31 = vsel %vm1007_vm5, %v3285_v10, %v1004_v5 }
 0x318   :  { %v992_v38 = vsel %vm986_vm6, %v983_v14, %v3352_v53  ;;  %v991_v61 = vsel %vm986_vm6, %v3306_v16, %v983_v14 }
 0x31b   :  { %1103 = vrot.lane.b32.xlu0 %v946_v18, %s2717_s5  ;;  %1123 = vrot.lane.b32.xlu1 %v969_v43, %s2717_s5  ;;  %v962_v60 = vpop.permute.xlu0 %961  ;;  %v3515_v43 = vpop.permute.xlu1 %1023 }
 0x31c   :  { %v971_v10 = vsel %vm965_vm7, %v962_v60, %v3358_v50  ;;  %v970_v55 = vsel %vm965_vm7, %v3322_v58, %v962_v60 }
 0x31f   :  { %1121 = vrot.lane.b32.xlu0 %v968_v6, %s2717_s5  ;;  %1087 = vrot.lane.b32.xlu1 %v925_v36, %s2717_s5  ;;  %v941_v24 = vpop.permute.xlu0 %940  ;;  %v3529_v36 = vpop.permute.xlu1 %1025 }
 0x320   :  { %v950_v16 = vsel %vm944_vm8, %v941_v24, %v3362_v22  ;;  %v949_v5 = vsel %vm944_vm8, %v3320_v12, %v941_v24  ;;  %v1577_v24 = vld [vmem:[%s4682_s8] sm:$0xff] }
 0x323   :  { %1085 = vrot.lane.b32.xlu0 %v924_v9, %s2717_s5  ;;  %1105 = vrot.lane.b32.xlu1 %v947_v57, %s2717_s5  ;;  %v920_v52 = vpop.permute.xlu0 %919  ;;  %v3541_v50 = vpop.permute.xlu1 %1029 }
 0x324   :  { %v929_v58 = vsel %vm923_vm9, %v920_v52, %v3368_v59  ;;  %v928_v9 = vsel %vm923_vm9, %v3326_v49, %v920_v52  ;;  %v3596_v52 = vld [vmem:[#allocation2] sm:$0xff] }
 0x327   :  { %1107 = vrot.lane.b32.xlu0 %v948_v32, %s2717_s5  ;;  %1069 = vrot.lane.b32.xlu1 %v903_v30, %s2717_s5  ;;  %v898_v26 = vpop.permute.xlu0 %897  ;;  %v1132_v14 = vpop.permute.xlu1 %1131 }
 0x328   :  { %v908_v12 = vsel %vm901_vm10, %v898_v26, %v3374_v37  ;;  %v907_v22 = vsel %vm901_vm10, %v3334_v56, %v898_v26 }
 0x32b   :  { %1067 = vrot.lane.b32.xlu1 %v902_v42, %s2717_s5  ;;  %1071 = vrot.lane.b32.xlu0 %v904_v45, %s2717_s5  ;;  %v874_v4 = vpop.permute.xlu0 %873  ;;  %v3562_v30 = vpop.permute.xlu1 %1099 }
 0x32c   :  { %v884_v49 = vsel %vm877_vm11, %v874_v4, %v876_v44  ;;  %v883_v32 = vsel %vm877_vm11, %v3340_v41, %v874_v4  ;;  %v804_v41 = vld [vmem:[%s4680_s7] sm:$0xff] }
 0x32f   :  { %1091 = vrot.lane.b32.xlu1 %v927_v46, %s2717_s5  ;;  %1089 = vrot.lane.b32.xlu0 %v926_v47, %s2717_s5  ;;  %v850_v18 = vpop.permute.xlu0 %849 }
 0x330   :  { %v860_v56 = vsel %vm853_vm12, %v850_v18, %v852_v2  ;;  %v859_v42 = vsel %vm853_vm12, %v3344_v1, %v850_v18  ;;  %v1578_v1 = vld [vmem:[%s4681_s9] sm:$0xff] }
 0x333   :  { %1053 = vrot.lane.b32.xlu0 %v879_v54, %s2717_s5  ;;  %1055 = vrot.lane.b32.xlu1 %v880_v7, %s2717_s5  ;;  %v3521_v6 = vpop.permute.xlu0 %1021 }
 0x337   :  { %1051 = vrot.lane.b32.xlu0 %v878_v35, %s2717_s5  ;;  %1073 = vrot.lane.b32.xlu1 %v905_v3, %s2717_s5  ;;  %v3533_v53 = vpop.permute.xlu0 %1027 }
 0x33b   :  { %1075 = vrot.lane.b32.xlu0 %v906_v17, %s2717_s5  ;;  %1037 = vrot.lane.b32.xlu1 %v855_v27, %s2717_s5  ;;  %v3547_v57 = vpop.permute.xlu0 %1031 }
 0x33f   :  { %1035 = vrot.lane.b32.xlu1 %v854_v11, %s2717_s5  ;;  %1039 = vrot.lane.b32.xlu0 %v856_v40, %s2717_s5  ;;  %v1148_v59 = vpop.permute.xlu0 %1147 }
 0x343   :  { %1059 = vrot.lane.b32.xlu1 %v882_v34, %s2717_s5  ;;  %1057 = vrot.lane.b32.xlu0 %v881_v8, %s2717_s5  ;;  %v1116_v37 = vpop.permute.xlu0 %1115 }
 0x347   :  { %1043 = vrot.lane.b32.xlu0 %v858_v25, %s2717_s5  ;;  %1041 = vrot.lane.b32.xlu1 %v857_v29, %s2717_s5  ;;  %v3569_v45 = vpop.permute.xlu0 %1083 }
 0x34b   :  { %1159 = vrot.lane.b32.xlu0 %v1013_v39, %s2717_s5  ;;  %1157 = vrot.lane.b32.xlu1 %v1012_v31, %s2717_s5 }
 0x34f   :  { %1143 = vrot.lane.b32.xlu0 %v992_v38, %s2717_s5  ;;  %1141 = vrot.lane.b32.xlu1 %v991_v61, %s2717_s5 }
 0x353   :  { %1127 = vrot.lane.b32.xlu0 %v971_v10, %s2717_s5  ;;  %1125 = vrot.lane.b32.xlu1 %v970_v55, %s2717_s5 }
 0x357   :  { %1111 = vrot.lane.b32.xlu1 %v950_v16, %s2717_s5  ;;  %1109 = vrot.lane.b32.xlu0 %v949_v5, %s2717_s5 }
 0x35b   :  { %1095 = vrot.lane.b32.xlu0 %v929_v58, %s2717_s5  ;;  %1093 = vrot.lane.b32.xlu1 %v928_v9, %s2717_s5 }
 0x35f   :  { %1079 = vrot.lane.b32.xlu1 %v908_v12, %s2717_s5  ;;  %1077 = vrot.lane.b32.xlu0 %v907_v22, %s2717_s5 }
 0x361   :  { %v3571_v60 = vpop.permute.xlu1 %1161 }
 0x363   :  { %1063 = vrot.lane.b32.xlu0 %v884_v49, %s2717_s5  ;;  %1061 = vrot.lane.b32.xlu1 %v883_v32, %s2717_s5 }
 0x365   :  { %v3578_v46 = vpop.permute.xlu0 %1145 }
 0x367   :  { %1047 = vrot.lane.b32.xlu1 %v860_v56, %s2717_s5  ;;  %1045 = vrot.lane.b32.xlu0 %v859_v42, %s2717_s5 }
 0x369   :  { %v3580_v47 = vpop.permute.xlu1 %1129 }
 0x36b   :  { %1065 = vrot.lane.b32.xlu1 %v876_v44, %s2717_s5  ;;  %1049 = vrot.lane.b32.xlu0 %v852_v2, %s2717_s5 }
 0x36d   :  { %v3590_v54 = vpop.permute.xlu0 %1113 }
 0x36f   :  { %1033 = vrot.lane.b32.xlu1 %v3185_v19, %s2717_s5  ;;  %1016 = vperm.xlu0 %2692, %v804_v41  }
 0x371   :  { %v3592_v7 = vpop.permute.xlu1 %1097 }
 0x373   :  { %1650 = vperm.xlu1 %2693, %v1578_v1   ;;  %1638 = vperm.xlu0 %2692, %v1577_v24  }
 0x375   :  { %v1152_v35 = vpop.permute.xlu1 %1151  ;;  %v3594_v3 = vpop.permute.xlu0 %1081 }
 0x377   :  { %1889 = vrot.lane.b32.xlu1 %v3596_v52, %s2713_s0 }
 0x379   :  { %v1134_v19 = vpop.permute.xlu1 %1133  ;;  %v1150_v17 = vpop.permute.xlu0 %1149 }
 0x37a   :  { %v1221_v27 = vsel %vm1163_vm13, %v1150_v17, %v1152_v35  ;;  %v1220_v26 = vsel %vm1163_vm13, %v1148_v59, %v1150_v17  ;;  %v1213_v34 = vsel %vm1163_vm13, %v1132_v14, %v1134_v19 }
 0x37b   :  { %1308 = vmatprep.subr.mxu0 %v1221_v27  ;;  %1866 = vrot.lane.b32.xlu1 %v3596_v52, %s2714_s3 }
 0x37c   :  { %1309 = vmatpush1.msra.mxu0 %v1220_v26 }
 0x37d   :  { %v3604_v11 = vpop.permute.xlu1 %1155  ;;  %v1136_v40 = vpop.permute.xlu0 %1135 }
 0x37e   :  { %v1214_v44 = vsel %vm1163_vm13, %v1134_v19, %v1136_v40 }
 0x37f   :  { %1310 = vmatprep.subr.mxu0 %v1214_v44 }
 0x380   :  { %1311 = vmatpush1.msra.mxu0 %v1213_v34 }
 0x381   :  { %v1120_v8 = vpop.permute.xlu1 %1119  ;;  %v1154_v4 = vpop.permute.xlu0 %1153 }
 0x382   :  { %v1223_v25 = vsel %vm1163_vm13, %v1154_v4, %v3604_v11  ;;  %v1222_v29 = vsel %vm1163_vm13, %v1152_v35, %v1154_v4 }
 0x383   :  { %1379 = vmatprep.subr.mxu1 %v1223_v25 }
 0x384   :  { %1380 = vmatpush1.msra.mxu1 %v1222_v29 }
 0x385   :  { %v1138_v2 = vpop.permute.xlu1 %1137  ;;  %v1118_v18 = vpop.permute.xlu0 %1117 }
 0x386   :  { %v1207_v39 = vsel %vm1163_vm13, %v1118_v18, %v1120_v8  ;;  %v1206_v31 = vsel %vm1163_vm13, %v1116_v37, %v1118_v18  ;;  %v1215_v55 = vsel %vm1163_vm13, %v1136_v40, %v1138_v2 }
 0x387   :  { %1312 = vmatprep.subr.mxu0 %v1207_v39 }
 0x388   :  { %1313 = vmatpush1.msra.mxu0 %v1206_v31 }
 0x389   :  { %v1102_v38 = vpop.permute.xlu1 %1101  ;;  %v3613_v61 = vpop.permute.xlu0 %1139 }
 0x38a   :  { %v1216_v10 = vsel %vm1163_vm13, %v1138_v2, %v3613_v61  ;;  %v1199_v9 = vsel %vm1163_vm13, %v3562_v30, %v1102_v38 }
 0x38b   :  { %1381 = vmatprep.subr.mxu1 %v1216_v10 }
 0x38c   :  { %1382 = vmatpush1.msra.mxu1 %v1215_v55 }
 0x38d   :  { %v3618_v16 = vpop.permute.xlu1 %1123  ;;  %v1104_v5 = vpop.permute.xlu0 %1103 }
 0x38e   :  { %v1200_v58 = vsel %vm1163_vm13, %v1102_v38, %v1104_v5 }
 0x38f   :  { %1314 = vmatprep.subr.mxu0 %v1200_v58  ;;  %v1165_v58 = vsel %vm1163_vm13, %v3521_v6, %v3515_v43 }
 0x390   :  { %1315 = vmatpush1.msra.mxu0 %v1199_v9  ;;  %v3656_v9 = vld [vmem:[%s4683_s6] sm:$0xff] }
 0x391   :  { %v1088_v12 = vpop.permute.xlu1 %1087  ;;  %v1122_v22 = vpop.permute.xlu0 %1121 }
 0x392   :  { %v1209_v14 = vsel %vm1163_vm13, %v1122_v22, %v3618_v16  ;;  %v1208_v59 = vsel %vm1163_vm13, %v1120_v8, %v1122_v22 }
 0x393   :  { %1383 = vmatprep.subr.mxu1 %v1209_v14  ;;  %v1164_v14 = vsel %vm1163_vm13, %v3275_v0, %v3521_v6  ;;  %v1167_v6 = vsel %vm1163_vm13, %v3529_v36, %v3533_v53 }
 0x394   :  { %1384 = vmatpush1.msra.mxu1 %v1208_v59 }
 0x395   :  { %v1106_v49 = vpop.permute.xlu1 %1105  ;;  %v1086_v32 = vpop.permute.xlu0 %1085 }
 0x396   :  { %v1193_v37 = vsel %vm1163_vm13, %v1086_v32, %v1088_v12  ;;  %v1192_v56 = vsel %vm1163_vm13, %v3569_v45, %v1086_v32  ;;  %v1201_v1 = vsel %vm1163_vm13, %v1104_v5, %v1106_v49 }
 0x397   :  { %1316 = vmatprep.subr.mxu0 %v1193_v37 }
 0x398   :  { %1317 = vmatpush1.msra.mxu0 %v1192_v56 }
 0x399   :  { %v1070_v30 = vpop.permute.xlu1 %1069  ;;  %v3629_v42 = vpop.permute.xlu0 %1107 }
 0x39a   :  { %v1202_v41 = vsel %vm1163_vm13, %v1106_v49, %v3629_v42 }
 0x39b   :  { %1385 = vmatprep.subr.mxu1 %v1202_v41 }
 0x39c   :  { %1386 = vmatpush1.msra.mxu1 %v1201_v1  ;;  %v1166_v1 = vsel %vm1163_vm13, %v3515_v43, %v3529_v36 }
 0x39d   :  { %v1068_v24 = vpop.permute.xlu1 %1067  ;;  %v1072_v35 = vpop.permute.xlu0 %1071 }
 0x39e   :  { %v1185_v19 = vsel %vm1163_vm13, %v1068_v24, %v1070_v30  ;;  %v1186_v17 = vsel %vm1163_vm13, %v1070_v30, %v1072_v35 }
 0x39f   :  { %1318 = vmatprep.subr.mxu0 %v1186_v17 }
 0x3a0   :  { %1319 = vmatpush1.msra.mxu0 %v1185_v19 }
 0x3a1   :  { %v3636_v45 = vpop.permute.xlu1 %1091  ;;  %v1090_v27 = vpop.permute.xlu0 %1089 }
 0x3a2   :  { %v1195_v26 = vsel %vm1163_vm13, %v1090_v27, %v3636_v45  ;;  %v1194_v40 = vsel %vm1163_vm13, %v1088_v12, %v1090_v27 }
 0x3a3   :  { %1387 = vmatprep.subr.mxu1 %v1195_v26 }
 0x3a4   :  { %1388 = vmatpush1.msra.mxu1 %v1194_v40 }
 0x3a5   :  { %v1056_v44 = vpop.permute.xlu1 %1055  ;;  %v1054_v34 = vpop.permute.xlu0 %1053 }
 0x3a6   :  { %v1179_v8 = vsel %vm1163_vm13, %v1054_v34, %v1056_v44 }
 0x3a7   :  { %1320 = vmatprep.subr.mxu0 %v1179_v8 }
 0x3a9   :  { %v1074_v4 = vpop.permute.xlu1 %1073  ;;  %v1052_v25 = vpop.permute.xlu0 %1051 }
 0x3aa   :  { %v1178_v29 = vsel %vm1163_vm13, %v1052_v25, %v1054_v34  ;;  %v1187_v31 = vsel %vm1163_vm13, %v1072_v35, %v1074_v4 }
 0x3ab   :  { %1321 = vmatpush1.msra.mxu0 %v1178_v29 }
 0x3ad   :  { %v1038_v2 = vpop.permute.xlu1 %1037  ;;  %v3643_v18 = vpop.permute.xlu0 %1075 }
 0x3ae   :  { %v1188_v39 = vsel %vm1163_vm13, %v1074_v4, %v3643_v18 }
 0x3af   :  { %1389 = vmatprep.subr.mxu1 %v1188_v39 }
 0x3b0   :  { %1390 = vmatpush1.msra.mxu1 %v1187_v31 }
 0x3b1   :  { %v1036_v38 = vpop.permute.xlu1 %1035  ;;  %v1040_v10 = vpop.permute.xlu0 %1039 }
 0x3b2   :  { %v1171_v55 = vsel %vm1163_vm13, %v1036_v38, %v1038_v2  ;;  %v1172_v5 = vsel %vm1163_vm13, %v1038_v2, %v1040_v10 }
 0x3b3   :  { %1322 = vmatprep.subr.mxu0 %v1172_v5 }
 0x3b4   :  { %1323 = vmatpush1.msra.mxu0 %v1171_v55 }
 0x3b5   :  { %v3658_v12 = vpop.permute.xlu1 %1059  ;;  %1324 = vmatprep.subr.mxu0 %v1165_v58  ;;  %v1058_v22 = vpop.permute.xlu0 %1057 }
 0x3b6   :  { %1325 = vmatpush1.msra.mxu0 %v1164_v14  ;;  %v1181_v59 = vsel %vm1163_vm13, %v1058_v22, %v3658_v12  ;;  %v1180_v49 = vsel %vm1163_vm13, %v1056_v44, %v1058_v22  ;;  %v1169_v14 = vsel %vm1163_vm13, %v3541_v50, %v3547_v57 }
 0x3b7   :  { %2602 = vmatmul.mubr.msk.f32.vlgmr.msra.gmra.mxu0 %vm1290_vm14, %v3656_v9  ;;  %1391 = vmatprep.subr.mxu1 %v1181_v59 }
 0x3b8   :  { %1392 = vmatpush1.msra.mxu1 %v1180_v49  ;;  %1500 = vmatprep.mubr.f32.mxu0 %v3596_v52 }
 0x3b9   :  { %v1042_v32 = vpop.permute.xlu1 %1041  ;;  %v3669_v37 = vpop.permute.xlu0 %1043 }
 0x3ba   :  { %v1174_v56 = vsel %vm1163_vm13, %v1042_v32, %v3669_v37  ;;  %v1173_v0 = vsel %vm1163_vm13, %v1040_v10, %v1042_v32 }
 0x3bb   :  { %1393 = vmatprep.subr.mxu1 %v1174_v56 }
 0x3bc   :  { %1394 = vmatpush1.msra.mxu1 %v1173_v0 }
 0x3bd   :  { %v1158_v30 = vpop.permute.xlu1 %1157  ;;  %1395 = vmatprep.subr.mxu1 %v1167_v6  ;;  %v1160_v41 = vpop.permute.xlu0 %1159 }
 0x3be   :  { %1396 = vmatpush1.msra.mxu1 %v1166_v1  ;;  %v1225_v24 = vsel %vm1163_vm13, %v1158_v30, %v1160_v41  ;;  %v1224_v35 = vsel %vm1163_vm13, %v3604_v11, %v1158_v30  ;;  %v1226_v19 = vsel %vm1163_vm13, %v1160_v41, %v3571_v60 }
 0x3bf   :  { %2603 = vmatmul.mubr.msk.f32.vlgmr.msra.gmra.mxu1 %vm1290_vm14, %v3656_v9  ;;  %1450 = vmatprep.subr.mxu0 %v1225_v24 }
 0x3c0   :  { %2637 = vmatprep.subr.mxu1 %v3596_v52  ;;  %1451 = vmatpush1.msra.mxu0 %v1224_v35 }
 0x3c1   :  { %2638 = vmatpush3.msra.mxu1 %v1226_v19  ;;  %v1142_v17 = vpop.permute.xlu1 %1141  ;;  %v1144_v27 = vpop.permute.xlu0 %1143  ;;  %2655 = vmatprep.mubr.msk.f32.mxu1 %vm2711_vm1, %v3596_v52 }
 0x3c2   :  { %2639 = vmatprep.subr.mxu1 %v3596_v52  ;;  %v1218_v43 = vsel %vm1163_vm13, %v1142_v17, %v1144_v27  ;;  %v1219_v36 = vsel %vm1163_vm13, %v1144_v27, %v3578_v46  ;;  %v1217_v60 = vsel %vm1163_vm13, %v3613_v61, %v1142_v17 }
 0x3c3   :  { %1452 = vmatprep.subr.mxu0 %v1218_v43  ;;  %2640 = vmatpush3.msra.mxu1 %v1219_v36 }
 0x3c4   :  { %1453 = vmatpush1.msra.mxu0 %v1217_v60  ;;  %2641 = vmatprep.subr.mxu1 %v3596_v52 }
 0x3c5   :  { %v1126_v11 = vpop.permute.xlu1 %1125  ;;  %v1128_v26 = vpop.permute.xlu0 %1127 }
 0x3c6   :  { %v1211_v40 = vsel %vm1163_vm13, %v1126_v11, %v1128_v26  ;;  %v1212_v44 = vsel %vm1163_vm13, %v1128_v26, %v3580_v47  ;;  %v1210_v34 = vsel %vm1163_vm13, %v3618_v16, %v1126_v11 }
 0x3c7   :  { %1454 = vmatprep.subr.mxu0 %v1211_v40  ;;  %2642 = vmatpush3.msra.mxu1 %v1212_v44 }
 0x3c8   :  { %1455 = vmatpush1.msra.mxu0 %v1210_v34  ;;  %2643 = vmatprep.subr.mxu1 %v3596_v52 }
 0x3c9   :  { %v1112_v46 = vpop.permute.xlu1 %1111  ;;  %v1110_v61 = vpop.permute.xlu0 %1109 }
 0x3ca   :  { %v1204_v8 = vsel %vm1163_vm13, %v1110_v61, %v1112_v46  ;;  %v1205_v4 = vsel %vm1163_vm13, %v1112_v46, %v3590_v54  ;;  %v1203_v25 = vsel %vm1163_vm13, %v3629_v42, %v1110_v61 }
 0x3cb   :  { %1456 = vmatprep.subr.mxu0 %v1204_v8  ;;  %2644 = vmatpush3.msra.mxu1 %v1205_v4 }
 0x3cc   :  { %1457 = vmatpush1.msra.mxu0 %v1203_v25  ;;  %2645 = vmatprep.subr.mxu1 %v3596_v52 }
 0x3cd   :  { %v1094_v47 = vpop.permute.xlu1 %1093  ;;  %v1096_v16 = vpop.permute.xlu0 %1095 }
 0x3ce   :  { %v1197_v29 = vsel %vm1163_vm13, %v1094_v47, %v1096_v16  ;;  %v1198_v2 = vsel %vm1163_vm13, %v1096_v16, %v3592_v7  ;;  %v1196_v39 = vsel %vm1163_vm13, %v3636_v45, %v1094_v47 }
 0x3cf   :  { %1458 = vmatprep.subr.mxu0 %v1197_v29  ;;  %2646 = vmatpush3.msra.mxu1 %v1198_v2  ;;  %v4747_v2 = vld [vmem:[#allocation21_spill] sm:$0xff] }
 0x3d0   :  { %1459 = vmatpush1.msra.mxu0 %v1196_v39  ;;  %2647 = vmatprep.subr.mxu1 %v3596_v52 }
 0x3d1   :  { %v1080_v54 = vpop.permute.xlu1 %1079  ;;  %v1078_v42 = vpop.permute.xlu0 %1077 }
 0x3d2   :  { %v1190_v31 = vsel %vm1163_vm13, %v1078_v42, %v1080_v54  ;;  %v1191_v38 = vsel %vm1163_vm13, %v1080_v54, %v3594_v3  ;;  %v1189_v10 = vsel %vm1163_vm13, %v3643_v18, %v1078_v42 }
 0x3d3   :  { %1460 = vmatprep.subr.mxu0 %v1190_v31  ;;  %2648 = vmatpush3.msra.mxu1 %v1191_v38  ;;  %v4748_v31 = vld [vmem:[#allocation8_spill] sm:$0xff] }
 0x3d4   :  { %1461 = vmatpush1.msra.mxu0 %v1189_v10  ;;  %2649 = vmatprep.subr.mxu1 %v3596_v52  ;;  %v4749_v10 = vld [vmem:[#allocation7_spill] sm:$0xff] }
 0x3d5   :  { %v1062_v7 = vpop.permute.xlu1 %1061  ;;  %v1064_v45 = vpop.permute.xlu0 %1063 }
 0x3d6   :  { %v1183_v55 = vsel %vm1163_vm13, %v1062_v7, %v1064_v45  ;;  %v1182_v5 = vsel %vm1163_vm13, %v3658_v12, %v1062_v7  ;;  %v1168_v12 = vsel %vm1163_vm13, %v3533_v53, %v3541_v50 }
 0x3d7   :  { %1462 = vmatprep.subr.mxu0 %v1183_v55  ;;  %v4750_v55 = vld [vmem:[#allocation20_spill] sm:$0xff] }
 0x3d8   :  { %1463 = vmatpush1.msra.mxu0 %v1182_v5 }
 0x3d9   :  { %v1048_v58 = vpop.permute.xlu1 %1047  ;;  %v1046_v22 = vpop.permute.xlu0 %1045 }
 0x3da   :  { %v1176_v3 = vsel %vm1163_vm13, %v1046_v22, %v1048_v58  ;;  %v1175_v18 = vsel %vm1163_vm13, %v3669_v37, %v1046_v22  ;;  %v4751_v22 = vld [vmem:[#allocation12_spill] sm:$0xff] }
 0x3db   :  { %1464 = vmatprep.subr.mxu0 %v1176_v3 }
 0x3dc   :  { %1465 = vmatpush1.msra.mxu0 %v1175_v18 }
 0x3dd   :  { %v1066_v59 = vpop.permute.xlu1 %1065  ;;  %1466 = vmatprep.subr.mxu0 %v1169_v14  ;;  %v1050_v49 = vpop.permute.xlu0 %1049  ;;  %v4752_v14 = vld [vmem:[#allocation10_spill] sm:$0xff] }
 0x3de   :  { %v1184_v32 = vsel %vm1163_vm13, %v1064_v45, %v1066_v59  ;;  %1467 = vmatpush1.msra.mxu0 %v1168_v12  ;;  %v1177_v37 = vsel %vm1163_vm13, %v1048_v58, %v1050_v49 }
 0x3df   :  { %2604 = vmatmul.mubr.msk.f32.vlgmr.msra.gmra.mxu0 %vm1290_vm14, %v3656_v9  ;;  %2650 = vmatpush3.msra.mxu1 %v1184_v32 }
 0x3e0   :  { %2651 = vmatprep.subr.mxu1 %v3596_v52  ;;  %2354 = vmatprep.mubr.f32.mxu0 %v3596_v52 }
 0x3e1   :  { %v1034_v56 = vpop.permute.xlu1 %1033  ;;  %2652 = vmatpush3.msra.mxu1 %v1177_v37 }
 0x3e2   :  { %v1170_v0 = vsel %vm1163_vm13, %v3547_v57, %v1034_v56  ;;  %2653 = vmatprep.subr.mxu1 %v3596_v52  ;;  %v4753_v56 = vld [vmem:[#allocation13_spill] sm:$0xff] }
 0x3e3   :  { %2654 = vmatpush3.msra.mxu1 %v1170_v0 }
 0x3e4   :  { %2656 = vmatmul.mubr.msk.f32.vlgmr.msra.gmra.mxu1 %vm1290_vm14, %v3656_v9 }
 0x3e5   :  { %2425 = vmatprep.mubr.f32.mxu1 %v3596_v52 }
 0x3ea   :  { %v1017_v6 = vpop.permute.xlu0 %1016 }
 0x477   :  { %v1360_v53 = vpop.f32.mrf.mxu0 }
 0x478   :  { %v3747_v1 = vadd.f32 %v1360_v53, %v1017_v6  ;;  %v4754_v53 = vld [vmem:[#allocation9_spill] sm:$0xff] }
 0x479   :  { %v1362_v50 = vpop.f32.mrf.mxu0 }
 0x47a   :  { %v3745_v41 = vadd.f32 %v1362_v50, %v1017_v6  ;;  %v1660_v17 = vmul.f32 %v3747_v1, %v2886_v28  ;;  %v1579_v43 = vmul.f32 %v3747_v1, %v2870_v13  ;;  %v1724_v34 = vmul.f32 %v3747_v1, %v2925_v62 }
 0x47c   :  { %v1661_v57 = vmul.f32 %v3745_v41, %v2890_v33  ;;  %v1580_v19 = vmul.f32 %v3745_v41, %v2877_v21  ;;  %v1725_v11 = vmul.f32 %v3745_v41, %v2928_v63 }
 0x47e   :  { %v1667_v60 = vadd.f32 %v1661_v57, %v1660_v17  ;;  %v1586_v26 = vadd.f32 %v1580_v19, %v1579_v43  ;;  %v1731_v25 = vadd.f32 %v1725_v11, %v1724_v34  ;;  %v4756_v17 = vld [vmem:[#allocation22_spill] sm:$0xff]  ;;  %v3808_v34 = vpop.permute.xlu1 %1650 }
 0x47f   :  { %v1431_v30 = vpop.f32.mrf.mxu1 }
 0x480   :  { %v3749_v24 = vadd.f32 %v1431_v30, %v1017_v6  ;;  %v4755_v30 = vld [vmem:[#allocation23_spill] sm:$0xff] }
 0x481   :  { %v1433_v35 = vpop.f32.mrf.mxu1 }
 0x482   :  { %v3755_v9 = vadd.f32 %v1433_v35, %v1017_v6  ;;  %v1662_v27 = vmul.f32 %v3749_v24, %v2906_v48  ;;  %v1581_v36 = vmul.f32 %v3749_v24, %v2875_v20  ;;  %v1726_v46 = vmul.f32 %v3749_v24, %v2954_v15 }
 0x484   :  { %v1663_v40 = vmul.f32 %v3755_v9, %v2908_v51  ;;  %v1668_v44 = vadd.f32 %v1667_v60, %v1662_v27  ;;  %v1582_v61 = vmul.f32 %v3755_v9, %v2879_v23  ;;  %v1587_v8 = vadd.f32 %v1586_v26, %v1581_v36 }
 0x485   :  { %v1727_v39 = vmul.f32 %v3755_v9, %v4747_v2  ;;  %v1732_v54 = vadd.f32 %v1731_v25, %v1726_v46  ;;  %v3810_v46 = vpop.permute.xlu1 %1889 }
 0x486   :  { %v1669_v29 = vadd.f32 %v1668_v44, %v1663_v40  ;;  %v1588_v45 = vadd.f32 %v1587_v8, %v1582_v61  ;;  %v3812_v61 = vpop.permute.xlu0 %1638 }
 0x487   :  { %v1733_v37 = vadd.f32 %v1732_v54, %v1727_v39 }
 0x489   :  { %v3814_v8 = vpop.permute.xlu1 %1866 }
 0x49f   :  { %v1502_v4 = vpop.f32.mrf.mxu0 }
 0x4a0   :  { %v3775_v47 = vadd.f32 %v1502_v4, %v1017_v6 }
 0x4a1   :  { %v1504_v16 = vpop.f32.mrf.mxu0 }
 0x4a2   :  { %v3779_v42 = vadd.f32 %v1504_v16, %v1017_v6  ;;  %v1664_v38 = vmul.f32 %v3775_v47, %v4748_v31  ;;  %v1583_v7 = vmul.f32 %v3775_v47, %v4749_v10  ;;  %v1728_v5 = vmul.f32 %v3775_v47, %v4750_v55 }
 0x4a4   :  { %v1573_v58 = vpop.f32.mrf.mxu1  ;;  %v1665_v3 = vmul.f32 %v3779_v42, %v4751_v22  ;;  %v1670_v18 = vadd.f32 %v1669_v29, %v1664_v38  ;;  %v1584_v59 = vmul.f32 %v3779_v42, %v4752_v14  ;;  %v1589_v49 = vadd.f32 %v1588_v45, %v1583_v7 }
 0x4a5   :  { %v3791_v12 = vadd.f32 %v1573_v58, %v1017_v6  ;;  %v1729_v27 = vmul.f32 %v3779_v42, %v4756_v17  ;;  %v1734_v43 = vadd.f32 %v1733_v37, %v1728_v5 }
 0x4a6   :  { %v2657_v32 = vpop.f32.mrf.mxu1  ;;  %v1671_v57 = vadd.f32 %v1670_v18, %v1665_v3  ;;  %v1590_v19 = vadd.f32 %v1589_v49, %v1584_v59 }
 0x4a7   :  { %v1666_v0 = vmul.f32 %v3791_v12, %v4753_v56  ;;  %v1585_v50 = vmul.f32 %v3791_v12, %v4754_v53  ;;  %v1730_v35 = vmul.f32 %v3791_v12, %v4755_v30  ;;  %v1735_v40 = vadd.f32 %v1734_v43, %v1729_v27 }
 0x4a9   :  { %v1672_v6 = vsel %vm458_vm2, %v1666_v0, 0.0  ;;  %v1591_v36 = vsel %vm458_vm2, %v1585_v50, 0.0  ;;  %v1736_v26 = vsel %vm458_vm2, %v1730_v35, 0.0 }
 0x4aa   :  { %v1673_v60 = vadd.f32 %v1672_v6, %v1671_v57  ;;  %v1592_v11 = vadd.f32 %v1591_v36, %v1590_v19  ;;  %v1737_v44 = vadd.f32 %v1736_v26, %v1735_v40 }
 0x4ac   :  { %1674 = vadd.xlane.f32.xlu0 %v1673_v60  ;;  %1593 = vadd.xlane.f32.xlu1 %v1592_v11 }
 0x4b0   :  { %1738 = vadd.xlane.f32.xlu0 %v1737_v44 }
 0x4bd   :  { %1843 = vrot.lane.b32.xlu1 %v3596_v52, %s2715_s4 }
 0x4c6   :  { %2017 = vrot.lane.b32.xlu0 %v3596_v52, %s2717_s5 }
 0x535   :  { %v1594_v4 = vpop.xlane.xlu1 %1593  ;;  %v1675_v25 = vpop.xlane.xlu0 %1674 }
 0x536   :  { %v1595_v16 = vmul.f32 0.0015432099, %v1594_v4  ;;  %v1676_v29 = vmul.f32 0.0030864198, %v1675_v25 }
 0x538   :  { %v3817_v39 = vsub.f32 %v3747_v1, %v1595_v16  ;;  %v3820_v54 = vsub.f32 %v3745_v41, %v1595_v16  ;;  %v3823_v52 = vsub.f32 %v3749_v24, %v1595_v16  ;;  %v3826_v38 = vsub.f32 %v3755_v9, %v1595_v16 }
 0x539   :  { %v3829_v7 = vsub.f32 %v3775_v47, %v1595_v16  ;;  %v3832_v45 = vsub.f32 %v3779_v42, %v1595_v16  ;;  %v3835_v5 = vsub.f32 %v3791_v12, %v1595_v16  ;;  %v1677_v59 = vsub.f32 %v3747_v1, %v1676_v29  ;;  %v1739_v49 = vpop.xlane.xlu0 %1738 }
 0x53a   :  { %v1603_v58 = vmul.f32 %v3817_v39, %v2870_v13  ;;  %v1604_v3 = vmul.f32 %v3820_v54, %v2877_v21  ;;  %v1605_v18 = vmul.f32 %v3823_v52, %v2875_v20  ;;  %v1606_v32 = vmul.f32 %v3826_v38, %v2879_v23 }
 0x53b   :  { %v1678_v50 = vsub.f32 %v3745_v41, %v1676_v29  ;;  %v1607_v35 = vmul.f32 %v3829_v7, %v4749_v10  ;;  %v1608_v57 = vmul.f32 %v3832_v45, %v4752_v14  ;;  %v1609_v19 = vmul.f32 %v3835_v5, %v4754_v53 }
 0x53c   :  { %v1610_v37 = vmul.f32 %v1603_v58, %v1603_v58  ;;  %v1611_v0 = vmul.f32 %v1604_v3, %v1604_v3  ;;  %v1612_v27 = vmul.f32 %v1605_v18, %v1605_v18  ;;  %v1679_v6 = vsub.f32 %v3749_v24, %v1676_v29 }
 0x53d   :  { %v1680_v36 = vsub.f32 %v3755_v9, %v1676_v29  ;;  %v1740_v60 = vmul.f32 0.0030864198, %v1739_v49  ;;  %v1681_v11 = vsub.f32 %v3775_v47, %v1676_v29  ;;  %v1683_v26 = vsub.f32 %v3791_v12, %v1676_v29 }
 0x53e   :  { %v1617_v43 = vadd.f32 %v1611_v0, %v1610_v37  ;;  %v3858_v40 = vmul.f32 %v1677_v59, %v2886_v28  ;;  %v1613_v44 = vmul.f32 %v1606_v32, %v1606_v32  ;;  %v3861_v25 = vmul.f32 %v1678_v50, %v2890_v33 }
 0x53f   :  { %v3864_v16 = vmul.f32 %v1679_v6, %v2906_v48  ;;  %v1614_v58 = vmul.f32 %v1607_v35, %v1607_v35  ;;  %v1616_v3 = vmul.f32 %v1609_v19, %v1609_v19  ;;  %v1682_v18 = vsub.f32 %v3779_v42, %v1676_v29 }
 0x540   :  { %v1618_v4 = vadd.f32 %v1617_v43, %v1612_v27  ;;  %v1691_v49 = vmul.f32 %v3858_v40, %v3858_v40  ;;  %v1615_v37 = vmul.f32 %v1608_v57, %v1608_v57  ;;  %v3870_v28 = vmul.f32 %v1680_v36, %v2908_v51 }
 0x541   :  { %v1692_v59 = vmul.f32 %v3861_v25, %v3861_v25  ;;  %v3875_v33 = vmul.f32 %v1681_v11, %v4748_v31  ;;  %v3878_v48 = vmul.f32 %v1683_v26, %v4753_v56  ;;  %v1693_v29 = vmul.f32 %v3864_v16, %v3864_v16 }
 0x542   :  { %v1619_v0 = vadd.f32 %v1618_v4, %v1613_v44  ;;  %v1741_v32 = vsub.f32 %v3747_v1, %v1740_v60  ;;  %v1742_v57 = vsub.f32 %v3745_v41, %v1740_v60  ;;  %v1743_v51 = vsub.f32 %v3749_v24, %v1740_v60 }
 0x543   :  { %v1698_v35 = vadd.f32 %v1692_v59, %v1691_v49  ;;  %v1622_v19 = vsel %vm458_vm2, %v1616_v3, 0.0  ;;  %v3887_v27 = vmul.f32 %v1682_v18, %v4751_v22  ;;  %v1744_v31 = vsub.f32 %v3755_v9, %v1740_v60 }
 0x544   :  { %v1620_v50 = vadd.f32 %v1619_v0, %v1614_v58  ;;  %v1694_v43 = vmul.f32 %v3870_v28, %v3870_v28  ;;  %v3893_v1 = vmul.f32 %v1741_v32, %v2925_v62  ;;  %v1695_v41 = vmul.f32 %v3875_v33, %v3875_v33 }
 0x545   :  { %v1699_v6 = vadd.f32 %v1698_v35, %v1693_v29  ;;  %v1745_v24 = vsub.f32 %v3775_v47, %v1740_v60  ;;  %v3899_v36 = vmul.f32 %v1742_v57, %v2928_v63  ;;  %v3902_v22 = vmul.f32 %v1743_v51, %v2954_v15  ;;  %v3938_v51 = vpop.permute.xlu1 %1843 }
 0x546   :  { %v1621_v56 = vadd.f32 %v1620_v50, %v1615_v37  ;;  %v1697_v11 = vmul.f32 %v3878_v48, %v3878_v48  ;;  %v1747_v44 = vsub.f32 %v3791_v12, %v1740_v60  ;;  %v1746_v62 = vsub.f32 %v3779_v42, %v1740_v60 }
 0x547   :  { %v1700_v26 = vadd.f32 %v1699_v6, %v1694_v43  ;;  %v3909_v4 = vmul.f32 %v1744_v31, %v4747_v2  ;;  %v1755_v47 = vmul.f32 %v3893_v1, %v3893_v1  ;;  %v1756_v63 = vmul.f32 %v3899_v36, %v3899_v36 }
 0x548   :  { %v1623_v9 = vadd.f32 %v1622_v19, %v1621_v56  ;;  %v1696_v15 = vmul.f32 %v3887_v27, %v3887_v27  ;;  %v3918_v3 = vmul.f32 %v1745_v24, %v4750_v55  ;;  %v1757_v42 = vmul.f32 %v3902_v22, %v3902_v22  ;;  %v3940_v56 = vpop.permute.xlu0 %2017 }
 0x549   :  { %v1701_v58 = vadd.f32 %v1700_v26, %v1695_v41  ;;  %v1762_v12 = vadd.f32 %v1756_v63, %v1755_v47  ;;  %v3923_v60 = vmul.f32 %v1747_v44, %v4755_v30  ;;  %v1703_v18 = vsel %vm458_vm2, %v1697_v11, 0.0  ;;  %4757 = vst [vmem:[#allocation21_spill] sm:$0xff] %v3940_v56 }
 0x54a   :  { %1624 = vadd.xlane.f32.xlu1 %v1623_v9  ;;  %v3927_v49 = vmul.f32 %v1746_v62, %v4756_v17  ;;  %v1758_v37 = vmul.f32 %v3909_v4, %v3909_v4  ;;  %v1759_v55 = vmul.f32 %v3918_v3, %v3918_v3 }
 0x54b   :  { %v1702_v2 = vadd.f32 %v1701_v58, %v1696_v15  ;;  %v1763_v0 = vadd.f32 %v1762_v12, %v1757_v42  ;;  %v1761_v32 = vmul.f32 %v3923_v60, %v3923_v60 }
 0x54c   :  { %v1760_v30 = vmul.f32 %v3927_v49, %v3927_v49 }
 0x54d   :  { %v1704_v59 = vadd.f32 %v1703_v18, %v1702_v2  ;;  %v1764_v29 = vadd.f32 %v1763_v0, %v1758_v37  ;;  %v1767_v17 = vsel %vm458_vm2, %v1761_v32, 0.0 }
 0x54f   :  { %1705 = vadd.xlane.f32.xlu0 %v1704_v59  ;;  %v1765_v50 = vadd.f32 %v1764_v29, %v1759_v55 }
 0x551   :  { %v1766_v35 = vadd.f32 %v1765_v50, %v1760_v30 }
 0x553   :  { %v1768_v57 = vadd.f32 %v1767_v17, %v1766_v35 }
 0x555   :  { %1769 = vadd.xlane.f32.xlu1 %v1768_v57 }
 0x5d3   :  { %v1625_v19 = vpop.xlane.xlu1 %1624 }
 0x5d4   :  { %v1626_v31 = vmul.f32 0.0015432099, %v1625_v19 }
 0x5d6   :  { %v1627_v43 = vadd.f32 1e-05, %v1626_v31 }
 0x5d8   :  { %2702 = vrsqrt.f32 %v1627_v43  ;;  %v1706_v6 = vpop.xlane.xlu0 %1705 }
 0x5d9   :  { %v1707_v41 = vmul.f32 0.0030864198, %v1706_v6 }
 0x5db   :  { %v1708_v24 = vadd.f32 1e-05, %v1707_v41 }
 0x5dd   :  { %2704 = vrsqrt.f32 %v1708_v24 }
 0x5de   :  { %v1770_v9 = vpop.xlane.xlu1 %1769 }
 0x5df   :  { %v1771_v11 = vmul.f32 0.0030864198, %v1770_v9 }
 0x5e1   :  { %v1772_v26 = vadd.f32 1e-05, %v1771_v11 }
 0x5e3   :  { %2706 = vrsqrt.f32 %v1772_v26 }
 0x5e5   :  { %v2703_v44 = vpop.eup %2702 }
 0x5e6   :  { %v1630_v62 = vmul.f32 %v2703_v44, %v3820_v54  ;;  %v1629_v47 = vmul.f32 %v2703_v44, %v3817_v39  ;;  %v1631_v63 = vmul.f32 %v2703_v44, %v3823_v52  ;;  %v1633_v15 = vmul.f32 %v2703_v44, %v3829_v7 }
 0x5e7   :  { %v1632_v58 = vmul.f32 %v2703_v44, %v3826_v38  ;;  %v1635_v42 = vmul.f32 %v2703_v44, %v3835_v5  ;;  %v1634_v12 = vmul.f32 %v2703_v44, %v3832_v45 }
 0x5e8   :  { %v1642_v2 = vmul.f32 %v3812_v61, %v1630_v62  ;;  %v1641_v18 = vmul.f32 %v3812_v61, %v1629_v47  ;;  %v1643_v37 = vmul.f32 %v3812_v61, %v1631_v63  ;;  %v1645_v54 = vmul.f32 %v3812_v61, %v1633_v15 }
 0x5e9   :  { %v1644_v39 = vmul.f32 %v3812_v61, %v1632_v58  ;;  %v1647_v52 = vmul.f32 %v3812_v61, %v1635_v42  ;;  %v1646_v7 = vmul.f32 %v3812_v61, %v1634_v12 }
 0x5ea   :  { %v2705_v0 = vpop.eup %2704  ;;  %v1654_v38 = vadd.f32 %v3808_v34, %v1642_v2  ;;  %v1653_v5 = vadd.f32 %v3808_v34, %v1641_v18  ;;  %v1655_v45 = vadd.f32 %v3808_v34, %v1643_v37  ;;  %v1657_v59 = vadd.f32 %v3808_v34, %v1645_v54 }
 0x5eb   :  { %v1711_v55 = vmul.f32 %v2705_v0, %v3861_v25  ;;  %v1710_v29 = vmul.f32 %v2705_v0, %v3858_v40  ;;  %v1656_v32 = vadd.f32 %v3808_v34, %v1644_v39  ;;  %v1659_v30 = vadd.f32 %v3808_v34, %v1647_v52 }
 0x5ec   :  { %v1712_v35 = vmul.f32 %v2705_v0, %v3864_v16  ;;  %v1714_v61 = vmul.f32 %v2705_v0, %v3875_v33  ;;  %v1713_v17 = vmul.f32 %v2705_v0, %v3870_v28  ;;  %v1716_v57 = vmul.f32 %v2705_v0, %v3878_v48 }
 0x5ed   :  { %v1715_v16 = vmul.f32 %v2705_v0, %v3887_v27 }
 0x5f0   :  { %v2707_v50 = vpop.eup %2706 }
 0x5f1   :  { %v1775_v19 = vmul.f32 %v2707_v50, %v3899_v36  ;;  %v1774_v31 = vmul.f32 %v2707_v50, %v3893_v1  ;;  %v1776_v25 = vmul.f32 %v2707_v50, %v3902_v22  ;;  %v1778_v40 = vmul.f32 %v2707_v50, %v3918_v3 }
 0x5f2   :  { %v1777_v43 = vmul.f32 %v2707_v50, %v3909_v4  ;;  %v1780_v6 = vmul.f32 %v2707_v50, %v3923_v60  ;;  %v1779_v33 = vmul.f32 %v2707_v50, %v3927_v49  ;;  %v1658_v1 = vadd.f32 %v3808_v34, %v1646_v7 }
 0x5f3   :  { %v1782_v41 = vadd.f32 %v1775_v19, %v1711_v55  ;;  %v1781_v28 = vadd.f32 %v1774_v31, %v1710_v29  ;;  %v1783_v24 = vadd.f32 %v1776_v25, %v1712_v35  ;;  %v1785_v48 = vadd.f32 %v1778_v40, %v1714_v61 }
 0x5f4   :  { %v1784_v9 = vadd.f32 %v1777_v43, %v1713_v17  ;;  %v1787_v36 = vadd.f32 %v1780_v6, %v1716_v57  ;;  %v1786_v11 = vadd.f32 %v1779_v33, %v1715_v16 }
 0x5f5   :  { %v1789_v22 = vadd.f32 %v1782_v41, %v1654_v38  ;;  %v1788_v26 = vadd.f32 %v1781_v28, %v1653_v5  ;;  %v1790_v3 = vadd.f32 %v1783_v24, %v1655_v45  ;;  %v1792_v44 = vadd.f32 %v1785_v48, %v1657_v59 }
 0x5f6   :  { %v1791_v4 = vadd.f32 %v1784_v9, %v1656_v32  ;;  %v1794_v62 = vadd.f32 %v1787_v36, %v1659_v30  ;;  %v1793_v60 = vadd.f32 %v1786_v11, %v1658_v1 }
 0x5f7   :  { %v1796_v47 = vmax.f32 %v1789_v22, 0.0  ;;  %v1795_v27 = vmax.f32 %v1788_v26, 0.0  ;;  %v1797_v63 = vmax.f32 %v1790_v3, 0.0  ;;  %v1799_v49 = vmax.f32 %v1792_v44, 0.0 }
 0x5f8   :  { %v1798_v15 = vmax.f32 %v1791_v4, 0.0  ;;  %v1801_v58 = vmax.f32 %v1794_v62, 0.0  ;;  %v1800_v42 = vmax.f32 %v1793_v60, 0.0 }
 0x5f9   :  { %v3978_v12 = vmul.f32 %v1796_v47, %v2877_v21  ;;  %v3981_v34 = vmul.f32 %v1795_v27, %v2870_v13  ;;  %v3984_v2 = vmul.f32 %v1797_v63, %v2875_v20  ;;  %v3987_v18 = vmul.f32 %v1799_v49, %v4749_v10 }
 0x5fa   :  { %v3990_v37 = vmul.f32 %v1798_v15, %v2879_v23  ;;  %v1808_v54 = vmul.f32 %v1801_v58, %v4754_v53  ;;  %v3994_v39 = vmul.f32 %v1800_v42, %v4752_v14 }
 0x5fb   :  { %1994 = vrot.lane.b32.xlu0 %v3978_v12, %s2719_s28  ;;  %1992 = vrot.lane.b32.xlu1 %v3981_v34, %s2719_s28 }
 0x5fc   :  { %4758 = vst [vmem:[#allocation8_spill] sm:$0xff] %v3994_v39  ;;  %1826 = vst.msk [vmem:[#allocation2 + $0x38] sm:$0xff] %vm458_vm2, %v1808_v54 }
 0x5ff   :  { %1972 = vrot.lane.b32.xlu0 %v3981_v34, %s2718_s27  ;;  %1996 = vrot.lane.b32.xlu1 %v3984_v2, %s2719_s28 }
 0x603   :  { %1976 = vrot.lane.b32.xlu0 %v3984_v2, %s2718_s27  ;;  %1974 = vrot.lane.b32.xlu1 %v3978_v12, %s2718_s27  ;;  %v4073_v52 = vld [vmem:[#allocation2 + $0x38] sm:$0xff] }
 0x604   :  { %4759 = vst [vmem:[#allocation20_spill] sm:$0xff] %v4073_v52 }
 0x607   :  { %2000 = vrot.lane.b32.xlu0 %v3987_v18, %s2719_s28  ;;  %1998 = vrot.lane.b32.xlu1 %v3990_v37, %s2719_s28 }
 0x60b   :  { %1954 = vrot.lane.b32.xlu0 %v3978_v12, %s2720_s29  ;;  %1952 = vrot.lane.b32.xlu1 %v3981_v34, %s2720_s29 }
 0x60f   :  { %1978 = vrot.lane.b32.xlu0 %v3990_v37, %s2718_s27  ;;  %1956 = vrot.lane.b32.xlu1 %v3984_v2, %s2720_s29 }
 0x613   :  { %1932 = vrot.lane.b32.xlu0 %v3981_v34, %s2721_s30  ;;  %1980 = vrot.lane.b32.xlu1 %v3987_v18, %s2718_s27 }
 0x617   :  { %1936 = vrot.lane.b32.xlu0 %v3984_v2, %s2721_s30  ;;  %1934 = vrot.lane.b32.xlu1 %v3978_v12, %s2721_s30 }
 0x61b   :  { %1960 = vrot.lane.b32.xlu0 %v3987_v18, %s2720_s29  ;;  %1958 = vrot.lane.b32.xlu1 %v3990_v37, %s2720_s29 }
 0x61f   :  { %1914 = vrot.lane.b32.xlu0 %v3978_v12, %s2722_s13  ;;  %1912 = vrot.lane.b32.xlu1 %v3981_v34, %s2722_s13 }
 0x623   :  { %1938 = vrot.lane.b32.xlu0 %v3990_v37, %s2721_s30  ;;  %1916 = vrot.lane.b32.xlu1 %v3984_v2, %s2722_s13 }
 0x627   :  { %1891 = vrot.lane.b32.xlu0 %v3981_v34, %s2713_s0  ;;  %1940 = vrot.lane.b32.xlu1 %v3987_v18, %s2721_s30 }
 0x62b   :  { %1895 = vrot.lane.b32.xlu0 %v3984_v2, %s2713_s0  ;;  %1893 = vrot.lane.b32.xlu1 %v3978_v12, %s2713_s0 }
 0x62f   :  { %1920 = vrot.lane.b32.xlu0 %v3987_v18, %s2722_s13  ;;  %1918 = vrot.lane.b32.xlu1 %v3990_v37, %s2722_s13 }
 0x633   :  { %1868 = vrot.lane.b32.xlu0 %v3981_v34, %s2714_s3  ;;  %1870 = vrot.lane.b32.xlu1 %v3978_v12, %s2714_s3 }
 0x637   :  { %1872 = vrot.lane.b32.xlu0 %v3984_v2, %s2714_s3  ;;  %1897 = vrot.lane.b32.xlu1 %v3990_v37, %s2713_s0 }
 0x63b   :  { %1899 = vrot.lane.b32.xlu0 %v3987_v18, %s2713_s0  ;;  %1847 = vrot.lane.b32.xlu1 %v3978_v12, %s2715_s4 }
 0x63f   :  { %1845 = vrot.lane.b32.xlu0 %v3981_v34, %s2715_s4  ;;  %1874 = vrot.lane.b32.xlu1 %v3990_v37, %s2714_s3 }
 0x643   :  { %1849 = vrot.lane.b32.xlu0 %v3984_v2, %s2715_s4  ;;  %1853 = vrot.lane.b32.xlu1 %v3987_v18, %s2715_s4 }
 0x647   :  { %1876 = vrot.lane.b32.xlu0 %v3987_v18, %s2714_s3  ;;  %2004 = vrot.lane.b32.xlu1 %v4073_v52, %s2719_s28 }
 0x64b   :  { %1851 = vrot.lane.b32.xlu0 %v3990_v37, %s2715_s4  ;;  %1984 = vrot.lane.b32.xlu1 %v4073_v52, %s2718_s27 }
 0x64f   :  { %2002 = vrot.lane.b32.xlu0 %v3994_v39, %s2719_s28  ;;  %1964 = vrot.lane.b32.xlu1 %v4073_v52, %s2720_s29 }
 0x653   :  { %1982 = vrot.lane.b32.xlu0 %v3994_v39, %s2718_s27  ;;  %1944 = vrot.lane.b32.xlu1 %v4073_v52, %s2721_s30 }
 0x657   :  { %1962 = vrot.lane.b32.xlu0 %v3994_v39, %s2720_s29  ;;  %1924 = vrot.lane.b32.xlu1 %v4073_v52, %s2722_s13 }
 0x65b   :  { %1942 = vrot.lane.b32.xlu0 %v3994_v39, %s2721_s30  ;;  %1903 = vrot.lane.b32.xlu1 %v4073_v52, %s2713_s0 }
 0x65f   :  { %1922 = vrot.lane.b32.xlu0 %v3994_v39, %s2722_s13  ;;  %1880 = vrot.lane.b32.xlu1 %v4073_v52, %s2714_s3 }
 0x663   :  { %1901 = vrot.lane.b32.xlu0 %v3994_v39, %s2713_s0  ;;  %1857 = vrot.lane.b32.xlu1 %v4073_v52, %s2715_s4 }
 0x667   :  { %1878 = vrot.lane.b32.xlu0 %v3994_v39, %s2714_s3  ;;  %2021 = vrot.lane.b32.xlu1 %v3978_v12, %s2717_s5 }
 0x66b   :  { %1855 = vrot.lane.b32.xlu0 %v3994_v39, %s2715_s4  ;;  %2023 = vrot.lane.b32.xlu1 %v3984_v2, %s2717_s5 }
 0x66d   :  { %v4115_v0 = vpop.permute.xlu0 %1994  ;;  %v4117_v7 = vpop.permute.xlu1 %1992 }
 0x66e   :  { %v2006_v14 = vsel %vm1007_vm5, %v4117_v7, %v4115_v0 }
 0x66f   :  { %2019 = vrot.lane.b32.xlu0 %v3981_v34, %s2717_s5 }
 0x671   :  { %v4121_v38 = vpop.permute.xlu0 %1972  ;;  %v4123_v5 = vpop.permute.xlu1 %1996 }
 0x672   :  { %2129 = vrot.lane.b32.xlu1 %v4121_v38, %s2717_s5  ;;  %v2007_v21 = vsel %vm1007_vm5, %v4115_v0, %v4123_v5 }
 0x673   :  { %2025 = vrot.lane.b32.xlu0 %v3990_v37, %s2717_s5 }
 0x675   :  { %v4129_v45 = vpop.permute.xlu0 %1976  ;;  %v4131_v59 = vpop.permute.xlu1 %1974 }
 0x676   :  { %v1987_v20 = vsel %vm986_vm6, %v4131_v59, %v4129_v45  ;;  %v1986_v56 = vsel %vm986_vm6, %v4121_v38, %v4131_v59 }
 0x677   :  { %2027 = vrot.lane.b32.xlu0 %v3987_v18, %s2717_s5 }
 0x679   :  { %v4135_v55 = vpop.permute.xlu0 %2000  ;;  %v4137_v29 = vpop.permute.xlu1 %1998 }
 0x67a   :  { %v2009_v13 = vsel %vm1007_vm5, %v4137_v29, %v4135_v55  ;;  %v2008_v52 = vsel %vm1007_vm5, %v4123_v5, %v4137_v29 }
 0x67b   :  { %2145 = vrot.lane.b32.xlu0 %v4117_v7, %s2717_s5 }
 0x67d   :  { %v4141_v32 = vpop.permute.xlu0 %1954  ;;  %v4143_v30 = vpop.permute.xlu1 %1952 }
 0x67f   :  { %2113 = vrot.lane.b32.xlu0 %v4143_v30, %s2717_s5 }
 0x681   :  { %v4147_v50 = vpop.permute.xlu0 %1978  ;;  %v4149_v35 = vpop.permute.xlu1 %1956 }
 0x682   :  { %v1967_v38 = vsel %vm965_vm7, %v4141_v32, %v4149_v35 }
 0x685   :  { %v4151_v61 = vpop.permute.xlu0 %1932  ;;  %v4153_v17 = vpop.permute.xlu1 %1980 }
 0x686   :  { %2097 = vrot.lane.b32.xlu1 %v4151_v61, %s2717_s5 }
 0x689   :  { %v4157_v57 = vpop.permute.xlu0 %1936  ;;  %v4159_v19 = vpop.permute.xlu1 %1934 }
 0x68d   :  { %v4161_v31 = vpop.permute.xlu0 %1960  ;;  %v4163_v25 = vpop.permute.xlu1 %1958 }
 0x691   :  { %v4165_v40 = vpop.permute.xlu0 %1914  ;;  %v4167_v43 = vpop.permute.xlu1 %1912 }
 0x692   :  { %2081 = vrot.lane.b32.xlu0 %v4167_v43, %s2717_s5 }
 0x695   :  { %v4171_v6 = vpop.permute.xlu0 %1938  ;;  %v4173_v16 = vpop.permute.xlu1 %1916 }
 0x699   :  { %v4175_v33 = vpop.permute.xlu0 %1891  ;;  %v4177_v41 = vpop.permute.xlu1 %1940 }
 0x69d   :  { %v4179_v28 = vpop.permute.xlu0 %1895  ;;  %v4181_v24 = vpop.permute.xlu1 %1893 }
 0x6a1   :  { %v4183_v48 = vpop.permute.xlu0 %1920  ;;  %v4185_v9 = vpop.permute.xlu1 %1918 }
 0x6a5   :  { %v4187_v36 = vpop.permute.xlu0 %1868  ;;  %v4189_v1 = vpop.permute.xlu1 %1870 }
 0x6a9   :  { %v4191_v11 = vpop.permute.xlu0 %1872  ;;  %v4193_v22 = vpop.permute.xlu1 %1897 }
 0x6ad   :  { %v4195_v26 = vpop.permute.xlu0 %1899  ;;  %v4197_v3 = vpop.permute.xlu1 %1847 }
 0x6b1   :  { %v4199_v44 = vpop.permute.xlu0 %1845  ;;  %v4201_v4 = vpop.permute.xlu1 %1874 }
 0x6b5   :  { %v4203_v62 = vpop.permute.xlu0 %1849  ;;  %v4205_v60 = vpop.permute.xlu1 %1853 }
 0x6b9   :  { %v4207_v47 = vpop.permute.xlu0 %1876  ;;  %v4209_v27 = vpop.permute.xlu1 %2004 }
 0x6ba   :  { %2159 = vrot.lane.b32.xlu1 %v4209_v27, %s2717_s5 }
 0x6bd   :  { %v4213_v63 = vpop.permute.xlu0 %1851  ;;  %v4215_v49 = vpop.permute.xlu1 %1984 }
 0x6be   :  { %2143 = vrot.lane.b32.xlu0 %v4215_v49, %s2717_s5 }
 0x6c1   :  { %v4219_v15 = vpop.permute.xlu0 %2002  ;;  %v4221_v58 = vpop.permute.xlu1 %1964 }
 0x6c2   :  { %2127 = vrot.lane.b32.xlu1 %v4221_v58, %s2717_s5 }
 0x6c5   :  { %v4225_v42 = vpop.permute.xlu0 %1982  ;;  %v4227_v12 = vpop.permute.xlu1 %1944 }
 0x6c6   :  { %2111 = vrot.lane.b32.xlu0 %v4227_v12, %s2717_s5 }
 0x6c9   :  { %v4231_v34 = vpop.permute.xlu0 %1962  ;;  %v4233_v2 = vpop.permute.xlu1 %1924 }
 0x6ca   :  { %2095 = vrot.lane.b32.xlu1 %v4233_v2, %s2717_s5 }
 0x6cd   :  { %v4237_v18 = vpop.permute.xlu0 %1942  ;;  %v4239_v37 = vpop.permute.xlu1 %1903 }
 0x6ce   :  { %2079 = vrot.lane.b32.xlu0 %v4239_v37, %s2717_s5 }
 0x6d1   :  { %v4243_v54 = vpop.permute.xlu0 %1922  ;;  %v4245_v53 = vpop.permute.xlu1 %1880 }
 0x6d2   :  { %2147 = vrot.lane.b32.xlu0 %v2006_v14, %s2717_s5  ;;  %2063 = vrot.lane.b32.xlu1 %v4245_v53, %s2717_s5 }
 0x6d5   :  { %v4253_v10 = vpop.permute.xlu0 %1901  ;;  %v4255_v23 = vpop.permute.xlu1 %1857 }
 0x6d6   :  { %2133 = vrot.lane.b32.xlu0 %v1987_v20, %s2717_s5  ;;  %2149 = vrot.lane.b32.xlu1 %v2007_v21, %s2717_s5  ;;  %v1966_v21 = vsel %vm965_vm7, %v4143_v30, %v4141_v32  ;;  %v1969_v32 = vsel %vm965_vm7, %v4163_v25, %v4161_v31  ;;  %v1946_v30 = vsel %vm944_vm8, %v4151_v61, %v4159_v19 }
 0x6d7   :  { %v1948_v61 = vsel %vm944_vm8, %v4157_v57, %v4171_v6 }
 0x6d9   :  { %v4265_v14 = vpop.permute.xlu0 %1878  ;;  %v2022_v7 = vpop.permute.xlu1 %2021 }
 0x6da   :  { %2153 = vrot.lane.b32.xlu0 %v2009_v13, %s2717_s5  ;;  %2131 = vrot.lane.b32.xlu1 %v1986_v56, %s2717_s5  ;;  %v1988_v56 = vsel %vm986_vm6, %v4129_v45, %v4147_v50  ;;  %v1989_v45 = vsel %vm986_vm6, %v4147_v50, %v4153_v17  ;;  %v1926_v50 = vsel %vm923_vm9, %v4167_v43, %v4165_v40 }
 0x6db   :  { %v1883_v43 = vsel %vm877_vm11, %v4187_v36, %v4189_v1 }
 0x6dd   :  { %v4275_v0 = vpop.permute.xlu0 %1855  ;;  %v2024_v20 = vpop.permute.xlu1 %2023 }
 0x6de   :  { %v4284_v39 = vsel %vm1163_vm13, %v2022_v7, %v2024_v20  ;;  %2115 = vrot.lane.b32.xlu0 %v1966_v21, %s2717_s5  ;;  %2151 = vrot.lane.b32.xlu1 %v2008_v52, %s2717_s5  ;;  %v1947_v52 = vsel %vm944_vm8, %v4159_v19, %v4157_v57  ;;  %v1927_v19 = vsel %vm923_vm9, %v4165_v40, %v4173_v16 }
 0x6df   :  { %v1929_v57 = vsel %vm923_vm9, %v4185_v9, %v4183_v48  ;;  %v1906_v40 = vsel %vm901_vm10, %v4175_v33, %v4181_v24 }
 0x6e1   :  { %v4288_v13 = vpop.permute.xlu0 %2019 }
 0x6e2   :  { %2135 = vrot.lane.b32.xlu0 %v1988_v56, %s2717_s5  ;;  %2117 = vrot.lane.b32.xlu1 %v1967_v38, %s2717_s5  ;;  %v4300_v5 = vsel %vm1163_vm13, %v4288_v13, %v2022_v7  ;;  %v1968_v7 = vsel %vm965_vm7, %v4149_v35, %v4163_v25  ;;  %v1907_v35 = vsel %vm901_vm10, %v4181_v24, %v4179_v28  ;;  %v4761_v38 = vld [vmem:[#allocation20_spill] sm:$0xff] }
 0x6e3   :  { %v1949_v25 = vsel %vm944_vm8, %v4171_v6, %v4177_v41  ;;  %v1928_v6 = vsel %vm923_vm9, %v4173_v16, %v4185_v9  ;;  %v1908_v24 = vsel %vm901_vm10, %v4179_v28, %v4193_v22  ;;  %v1882_v16 = vsel %vm877_vm11, %v3814_v8, %v4187_v36 }
 0x6e4   :  { %v1884_v9 = vsel %vm877_vm11, %v4189_v1, %v4191_v11  ;;  %v1860_v8 = vsel %vm853_vm12, %v4199_v44, %v4197_v3  ;;  %v1886_v28 = vsel %vm877_vm11, %v4201_v4, %v4207_v47  ;;  %v1885_v36 = vsel %vm877_vm11, %v4191_v11, %v4201_v4 }
 0x6e5   :  { %v4302_v59 = vpop.permute.xlu0 %2025  ;;  %v1862_v1 = vsel %vm853_vm12, %v4203_v62, %v4213_v63  ;;  %v1863_v11 = vsel %vm853_vm12, %v4213_v63, %v4205_v60  ;;  %v1991_v4 = vsel %vm986_vm6, %v4225_v42, %v4215_v49  ;;  %v1930_v63 = vsel %vm923_vm9, %v4183_v48, %v4243_v54 }
 0x6e6   :  { %2101 = vrot.lane.b32.xlu0 %v1947_v52, %s2717_s5  ;;  %2137 = vrot.lane.b32.xlu1 %v1989_v45, %s2717_s5  ;;  %v4314_v29 = vsel %vm1163_vm13, %v2024_v20, %v4302_v59  ;;  %v1905_v20 = vsel %vm901_vm10, %v3810_v46, %v4175_v33  ;;  %v1909_v46 = vsel %vm901_vm10, %v4193_v22, %v4195_v26 }
 0x6e7   :  { %v1861_v33 = vsel %vm853_vm12, %v4197_v3, %v4203_v62  ;;  %v1859_v22 = vsel %vm853_vm12, %v3938_v51, %v4199_v44  ;;  %v2011_v3 = vsel %vm1007_vm5, %v4219_v15, %v4209_v27  ;;  %v2010_v51 = vsel %vm1007_vm5, %v4135_v55, %v4219_v15 }
 0x6e8   :  { %v1970_v44 = vsel %vm965_vm7, %v4161_v31, %v4231_v34  ;;  %v1990_v62 = vsel %vm986_vm6, %v4153_v17, %v4225_v42  ;;  %v1951_v27 = vsel %vm944_vm8, %v4237_v18, %v4227_v12  ;;  %v1971_v31 = vsel %vm965_vm7, %v4231_v34, %v4221_v58 }
 0x6e9   :  { %v4436_v55 = vpop.permute.xlu0 %2027  ;;  %v1950_v17 = vsel %vm944_vm8, %v4177_v41, %v4237_v18  ;;  %v1911_v49 = vsel %vm901_vm10, %v4253_v10, %v4239_v37  ;;  %v1931_v48 = vsel %vm923_vm9, %v4243_v54, %v4233_v2  ;;  %v1887_v58 = vsel %vm877_vm11, %v4207_v47, %v4265_v14  ;;  %v2130_v41 = vpop.permute.xlu1 %2129 }
 0x6ea   :  { %2121 = vrot.lane.b32.xlu0 %v1969_v32, %s2717_s5  ;;  %2099 = vrot.lane.b32.xlu1 %v1946_v30, %s2717_s5  ;;  %v1910_v12 = vsel %vm901_vm10, %v4195_v26, %v4253_v10  ;;  %v1865_v34 = vsel %vm853_vm12, %v4275_v0, %v4255_v23  ;;  %v1888_v18 = vsel %vm877_vm11, %v4265_v14, %v4245_v53  ;;  %v1810_v10 = vld [vmem:[%s4684_s11] sm:$0xff] }
 0x6eb   :  { %v1864_v54 = vsel %vm853_vm12, %v4205_v60, %v4275_v0 }
 0x6ed   :  { %v2146_v15 = vpop.permute.xlu0 %2145 }
 0x6ee   :  { %2083 = vrot.lane.b32.xlu0 %v1926_v50, %s2717_s5  ;;  %2119 = vrot.lane.b32.xlu1 %v1968_v7, %s2717_s5 }
 0x6f1   :  { %v2114_v42 = vpop.permute.xlu0 %2113 }
 0x6f2   :  { %2103 = vrot.lane.b32.xlu0 %v1948_v61, %s2717_s5  ;;  %2085 = vrot.lane.b32.xlu1 %v1927_v19, %s2717_s5 }
 0x6f6   :  { %2069 = vrot.lane.b32.xlu0 %v1907_v35, %s2717_s5  ;;  %2105 = vrot.lane.b32.xlu1 %v1949_v25, %s2717_s5 }
 0x6f8   :  { %v2098_v2 = vpop.permute.xlu1 %2097 }
 0x6fa   :  { %2089 = vrot.lane.b32.xlu0 %v1929_v57, %s2717_s5  ;;  %2067 = vrot.lane.b32.xlu1 %v1906_v40, %s2717_s5 }
 0x6fe   :  { %2051 = vrot.lane.b32.xlu0 %v1883_v43, %s2717_s5  ;;  %2087 = vrot.lane.b32.xlu1 %v1928_v6, %s2717_s5 }
 0x702   :  { %2071 = vrot.lane.b32.xlu0 %v1908_v24, %s2717_s5  ;;  %2065 = vrot.lane.b32.xlu1 %v1905_v20, %s2717_s5 }
 0x704   :  { %v4470_v47 = vpop.permute.xlu0 %2081 }
 0x706   :  { %2049 = vrot.lane.b32.xlu0 %v1882_v16, %s2717_s5  ;;  %2053 = vrot.lane.b32.xlu1 %v1884_v9, %s2717_s5 }
 0x70a   :  { %2037 = vrot.lane.b32.xlu0 %v1861_v33, %s2717_s5  ;;  %2073 = vrot.lane.b32.xlu1 %v1909_v46, %s2717_s5 }
 0x70e   :  { %2057 = vrot.lane.b32.xlu0 %v1886_v28, %s2717_s5  ;;  %2035 = vrot.lane.b32.xlu1 %v1860_v8, %s2717_s5 }
 0x712   :  { %2039 = vrot.lane.b32.xlu0 %v1862_v1, %s2717_s5  ;;  %2055 = vrot.lane.b32.xlu1 %v1885_v36, %s2717_s5 }
 0x716   :  { %2157 = vrot.lane.b32.xlu0 %v2011_v3, %s2717_s5  ;;  %2033 = vrot.lane.b32.xlu1 %v1859_v22, %s2717_s5 }
 0x71a   :  { %2141 = vrot.lane.b32.xlu0 %v1991_v4, %s2717_s5  ;;  %2041 = vrot.lane.b32.xlu1 %v1863_v11, %s2717_s5 }
 0x71e   :  { %2123 = vrot.lane.b32.xlu0 %v1970_v44, %s2717_s5  ;;  %2155 = vrot.lane.b32.xlu1 %v2010_v51, %s2717_s5 }
 0x722   :  { %2109 = vrot.lane.b32.xlu0 %v1951_v27, %s2717_s5  ;;  %2139 = vrot.lane.b32.xlu1 %v1990_v62, %s2717_s5 }
 0x726   :  { %2091 = vrot.lane.b32.xlu0 %v1930_v63, %s2717_s5  ;;  %2125 = vrot.lane.b32.xlu1 %v1971_v31, %s2717_s5 }
 0x72a   :  { %2077 = vrot.lane.b32.xlu0 %v1911_v49, %s2717_s5  ;;  %2107 = vrot.lane.b32.xlu1 %v1950_v17, %s2717_s5 }
 0x72c   :  { %v4481_v26 = vpop.permute.xlu1 %2159 }
 0x72e   :  { %2059 = vrot.lane.b32.xlu0 %v1887_v58, %s2717_s5  ;;  %2093 = vrot.lane.b32.xlu1 %v1931_v48, %s2717_s5 }
 0x730   :  { %v4483_v37 = vpop.permute.xlu0 %2143 }
 0x732   :  { %2075 = vrot.lane.b32.xlu1 %v1910_v12, %s2717_s5  ;;  %2045 = vrot.lane.b32.xlu0 %v1865_v34, %s2717_s5 }
 0x734   :  { %v4489_v53 = vpop.permute.xlu1 %2127 }
 0x736   :  { %2061 = vrot.lane.b32.xlu1 %v1888_v18, %s2717_s5  ;;  %2047 = vrot.lane.b32.xlu0 %v4255_v23, %s2717_s5  ;;  %v4760_v23 = vld [vmem:[#allocation8_spill] sm:$0xff] }
 0x738   :  { %v4491_v14 = vpop.permute.xlu0 %2111 }
 0x73a   :  { %2043 = vrot.lane.b32.xlu1 %v1864_v54, %s2717_s5  ;;  %2014 = vperm.xlu0 %2692, %v1810_v10  }
 0x73c   :  { %v4495_v21 = vpop.permute.xlu1 %2095 }
 0x73e   :  { %2029 = vrot.lane.b32.xlu1 %v4760_v23, %s2717_s5 }
 0x740   :  { %v4497_v56 = vpop.permute.xlu0 %2079 }
 0x742   :  { %2031 = vrot.lane.b32.xlu1 %v4761_v38, %s2717_s5 }
 0x744   :  { %v2148_v52 = vpop.permute.xlu0 %2147  ;;  %v4501_v45 = vpop.permute.xlu1 %2063 }
 0x745   :  { %v2217_v30 = vsel %vm1163_vm13, %v2146_v15, %v2148_v52 }
 0x748   :  { %v2134_v60 = vpop.permute.xlu0 %2133  ;;  %v2150_v0 = vpop.permute.xlu1 %2149 }
 0x749   :  { %v2218_v32 = vsel %vm1163_vm13, %v2148_v52, %v2150_v0 }
 0x74a   :  { %2304 = vmatprep.subr.mxu0 %v2218_v32 }
 0x74b   :  { %2305 = vmatpush1.msra.mxu0 %v2217_v30 }
 0x74c   :  { %v4505_v50 = vpop.permute.xlu0 %2153  ;;  %v2132_v7 = vpop.permute.xlu1 %2131 }
 0x74d   :  { %v2210_v61 = vsel %vm1163_vm13, %v2130_v41, %v2132_v7  ;;  %v2211_v19 = vsel %vm1163_vm13, %v2132_v7, %v2134_v60 }
 0x74e   :  { %2306 = vmatprep.subr.mxu0 %v2211_v19 }
 0x74f   :  { %2307 = vmatpush1.msra.mxu0 %v2210_v61 }
 0x750   :  { %v2116_v35 = vpop.permute.xlu0 %2115  ;;  %v2152_v25 = vpop.permute.xlu1 %2151 }
 0x751   :  { %v2219_v57 = vsel %vm1163_vm13, %v2150_v0, %v2152_v25  ;;  %v2220_v40 = vsel %vm1163_vm13, %v2152_v25, %v4505_v50  ;;  %v2203_v20 = vsel %vm1163_vm13, %v2114_v42, %v2116_v35 }
 0x752   :  { %2375 = vmatprep.subr.mxu1 %v2220_v40 }
 0x753   :  { %2376 = vmatpush1.msra.mxu1 %v2219_v57 }
 0x754   :  { %v2136_v43 = vpop.permute.xlu0 %2135  ;;  %v2118_v6 = vpop.permute.xlu1 %2117 }
 0x755   :  { %v2204_v24 = vsel %vm1163_vm13, %v2116_v35, %v2118_v6  ;;  %v2212_v33 = vsel %vm1163_vm13, %v2134_v60, %v2136_v43 }
 0x756   :  { %2308 = vmatprep.subr.mxu0 %v2204_v24  ;;  %v4558_v24 = vld [vmem:[%s4685_s10] sm:$0xff] }
 0x757   :  { %2309 = vmatpush1.msra.mxu0 %v2203_v20  ;;  %v4762_v20 = vld [vmem:[#allocation21_spill] sm:$0xff] }
 0x758   :  { %v2102_v16 = vpop.permute.xlu0 %2101  ;;  %v4514_v9 = vpop.permute.xlu1 %2137 }
 0x759   :  { %v2213_v46 = vsel %vm1163_vm13, %v2136_v43, %v4514_v9 }
 0x75a   :  { %2377 = vmatprep.subr.mxu1 %v2213_v46 }
 0x75b   :  { %2378 = vmatpush1.msra.mxu1 %v2212_v33 }
 0x75c   :  { %v4519_v8 = vpop.permute.xlu0 %2121  ;;  %v2100_v28 = vpop.permute.xlu1 %2099 }
 0x75d   :  { %v2196_v36 = vsel %vm1163_vm13, %v2098_v2, %v2100_v28  ;;  %v2197_v1 = vsel %vm1163_vm13, %v2100_v28, %v2102_v16 }
 0x75e   :  { %2310 = vmatprep.subr.mxu0 %v2197_v1  ;;  %v4571_v1 = vld [vmem:[#allocation2] sm:$0xff] }
 0x75f   :  { %2311 = vmatpush1.msra.mxu0 %v2196_v36 }
 0x760   :  { %v2084_v22 = vpop.permute.xlu0 %2083  ;;  %v2120_v3 = vpop.permute.xlu1 %2119 }
 0x761   :  { %v2205_v11 = vsel %vm1163_vm13, %v2118_v6, %v2120_v3  ;;  %v2206_v4 = vsel %vm1163_vm13, %v2120_v3, %v4519_v8  ;;  %v2189_v27 = vsel %vm1163_vm13, %v4470_v47, %v2084_v22 }
 0x762   :  { %2379 = vmatprep.subr.mxu1 %v2206_v4 }
 0x763   :  { %2380 = vmatpush1.msra.mxu1 %v2205_v11 }
 0x764   :  { %v2104_v51 = vpop.permute.xlu0 %2103  ;;  %v2086_v44 = vpop.permute.xlu1 %2085 }
 0x765   :  { %v2190_v62 = vsel %vm1163_vm13, %v2084_v22, %v2086_v44  ;;  %v2198_v49 = vsel %vm1163_vm13, %v2102_v16, %v2104_v51  ;;  %v2161_v16 = vsel %vm1163_vm13, %v4762_v20, %v4288_v13 }
 0x766   :  { %2312 = vmatprep.subr.mxu0 %v2190_v62 }
 0x767   :  { %2313 = vmatpush1.msra.mxu0 %v2189_v27 }
 0x768   :  { %v2070_v31 = vpop.permute.xlu0 %2069  ;;  %v4529_v63 = vpop.permute.xlu1 %2105 }
 0x769   :  { %v2199_v17 = vsel %vm1163_vm13, %v2104_v51, %v4529_v63 }
 0x76a   :  { %2381 = vmatprep.subr.mxu1 %v2199_v17 }
 0x76b   :  { %2382 = vmatpush1.msra.mxu1 %v2198_v49 }
 0x76c   :  { %v4534_v15 = vpop.permute.xlu0 %2089  ;;  %v2068_v48 = vpop.permute.xlu1 %2067 }
 0x76d   :  { %v2183_v58 = vsel %vm1163_vm13, %v2068_v48, %v2070_v31 }
 0x76e   :  { %2314 = vmatprep.subr.mxu0 %v2183_v58 }
 0x770   :  { %v2052_v41 = vpop.permute.xlu0 %2051  ;;  %v2088_v42 = vpop.permute.xlu1 %2087 }
 0x771   :  { %v2191_v12 = vsel %vm1163_vm13, %v2086_v44, %v2088_v42  ;;  %v2192_v34 = vsel %vm1163_vm13, %v2088_v42, %v4534_v15 }
 0x772   :  { %2383 = vmatprep.subr.mxu1 %v2192_v34 }
 0x773   :  { %2384 = vmatpush1.msra.mxu1 %v2191_v12 }
 0x774   :  { %v2072_v2 = vpop.permute.xlu0 %2071  ;;  %v2066_v47 = vpop.permute.xlu1 %2065 }
 0x775   :  { %v2182_v18 = vsel %vm1163_vm13, %v2066_v47, %v2068_v48  ;;  %v2184_v32 = vsel %vm1163_vm13, %v2070_v31, %v2072_v2 }
 0x776   :  { %2315 = vmatpush1.msra.mxu0 %v2182_v18 }
 0x778   :  { %v2050_v10 = vpop.permute.xlu0 %2049  ;;  %v2054_v54 = vpop.permute.xlu1 %2053 }
 0x779   :  { %v2175_v23 = vsel %vm1163_vm13, %v2050_v10, %v2052_v41  ;;  %v2176_v38 = vsel %vm1163_vm13, %v2052_v41, %v2054_v54 }
 0x77a   :  { %2316 = vmatprep.subr.mxu0 %v2176_v38 }
 0x77b   :  { %2317 = vmatpush1.msra.mxu0 %v2175_v23 }
 0x77c   :  { %v2038_v52 = vpop.permute.xlu0 %2037  ;;  %v4543_v60 = vpop.permute.xlu1 %2073 }
 0x77d   :  { %v2185_v0 = vsel %vm1163_vm13, %v2072_v2, %v4543_v60 }
 0x77e   :  { %2385 = vmatprep.subr.mxu1 %v2185_v0 }
 0x77f   :  { %2386 = vmatpush1.msra.mxu1 %v2184_v32 }
 0x780   :  { %v4548_v30 = vpop.permute.xlu0 %2057  ;;  %v2036_v7 = vpop.permute.xlu1 %2035 }
 0x781   :  { %v2169_v61 = vsel %vm1163_vm13, %v2036_v7, %v2038_v52 }
 0x782   :  { %2318 = vmatprep.subr.mxu0 %v2169_v61 }
 0x784   :  { %v2040_v19 = vpop.permute.xlu0 %2039  ;;  %v2056_v35 = vpop.permute.xlu1 %2055 }
 0x785   :  { %v2177_v25 = vsel %vm1163_vm13, %v2054_v54, %v2056_v35  ;;  %v2178_v57 = vsel %vm1163_vm13, %v2056_v35, %v4548_v30  ;;  %v2170_v36 = vsel %vm1163_vm13, %v2038_v52, %v2040_v19  ;;  %v4763_v35 = vld [vmem:[#allocation11_spill] sm:$0xff] }
 0x786   :  { %2387 = vmatprep.subr.mxu1 %v2178_v57 }
 0x787   :  { %2388 = vmatpush1.msra.mxu1 %v2177_v25 }
 0x788   :  { %v2158_v40 = vpop.permute.xlu0 %2157  ;;  %v2034_v43 = vpop.permute.xlu1 %2033 }
 0x789   :  { %v2168_v6 = vsel %vm1163_vm13, %v2034_v43, %v2036_v7  ;;  %v2223_v11 = vsel %vm1163_vm13, %v2158_v40, %v4481_v26 }
 0x78a   :  { %2319 = vmatpush1.msra.mxu0 %v2168_v6 }
 0x78b   :  { %2320 = vmatprep.subr.mxu0 %v4300_v5 }
 0x78c   :  { %v2142_v46 = vpop.permute.xlu0 %2141  ;;  %2321 = vmatpush1.msra.mxu0 %v2161_v16  ;;  %v4564_v33 = vpop.permute.xlu1 %2041  ;;  %v4766_v16 = vld [vmem:[#allocation5_spill] sm:$0xff] }
 0x78d   :  { %2606 = vmatmul.mubr.msk.f32.vlgmr.msra.gmra.mxu0 %vm1290_vm14, %v4558_v24  ;;  %v2171_v28 = vsel %vm1163_vm13, %v2040_v19, %v4564_v33 }
 0x78e   :  { %2389 = vmatprep.subr.mxu1 %v2171_v28  ;;  %2496 = vmatprep.mubr.f32.mxu0 %v4571_v1 }
 0x78f   :  { %2390 = vmatpush1.msra.mxu1 %v2170_v36 }
 0x790   :  { %v2124_v13 = vpop.permute.xlu0 %2123  ;;  %2391 = vmatprep.subr.mxu1 %v4314_v29  ;;  %v2156_v5 = vpop.permute.xlu1 %2155 }
 0x791   :  { %v2221_v22 = vsel %vm1163_vm13, %v4505_v50, %v2156_v5  ;;  %2392 = vmatpush1.msra.mxu1 %v4284_v39  ;;  %v2222_v3 = vsel %vm1163_vm13, %v2156_v5, %v2158_v40  ;;  %v2216_v39 = vsel %vm1163_vm13, %v2142_v46, %v4483_v37  ;;  %v2207_v37 = vsel %vm1163_vm13, %v4519_v8, %v2124_v13  ;;  %v4765_v40 = vld [vmem:[#allocation15_spill] sm:$0xff]  ;;  %v4769_v5 = vld [vmem:[#allocation16_spill] sm:$0xff] }
 0x792   :  { %2607 = vmatmul.mubr.msk.f32.vlgmr.msra.gmra.mxu1 %vm1290_vm14, %v4558_v24  ;;  %2446 = vmatprep.subr.mxu0 %v2222_v3  ;;  %v4770_v3 = vld [vmem:[#allocation6_spill] sm:$0xff] }
 0x793   :  { %2658 = vmatprep.subr.mxu1 %v4571_v1  ;;  %2447 = vmatpush1.msra.mxu0 %v2221_v22 }
 0x794   :  { %2659 = vmatpush3.msra.mxu1 %v2223_v11  ;;  %v2110_v29 = vpop.permute.xlu0 %2109  ;;  %v2140_v4 = vpop.permute.xlu1 %2139  ;;  %2676 = vmatprep.mubr.msk.f32.mxu1 %vm2711_vm1, %v4571_v1 }
 0x795   :  { %2660 = vmatprep.subr.mxu1 %v4571_v1  ;;  %v2214_v50 = vsel %vm1163_vm13, %v4514_v9, %v2140_v4  ;;  %v2215_v51 = vsel %vm1163_vm13, %v2140_v4, %v2142_v46  ;;  %v2202_v9 = vsel %vm1163_vm13, %v2110_v29, %v4491_v14 }
 0x796   :  { %2661 = vmatpush3.msra.mxu1 %v2216_v39  ;;  %2448 = vmatprep.subr.mxu0 %v2215_v51 }
 0x797   :  { %2449 = vmatpush1.msra.mxu0 %v2214_v50  ;;  %2662 = vmatprep.subr.mxu1 %v4571_v1  ;;  %v4771_v50 = vld [vmem:[#allocation17_spill] sm:$0xff] }
 0x798   :  { %v2092_v26 = vpop.permute.xlu0 %2091  ;;  %v2126_v44 = vpop.permute.xlu1 %2125 }
 0x799   :  { %v2209_v62 = vsel %vm1163_vm13, %v2126_v44, %v4489_v53  ;;  %v2208_v27 = vsel %vm1163_vm13, %v2124_v13, %v2126_v44  ;;  %v2193_v41 = vsel %vm1163_vm13, %v4534_v15, %v2092_v26 }
 0x79a   :  { %2450 = vmatprep.subr.mxu0 %v2208_v27  ;;  %2663 = vmatpush3.msra.mxu1 %v2209_v62  ;;  %v4772_v27 = vld [vmem:[#allocation7_spill] sm:$0xff] }
 0x79b   :  { %2451 = vmatpush1.msra.mxu0 %v2207_v37  ;;  %2664 = vmatprep.subr.mxu1 %v4571_v1 }
 0x79c   :  { %v2078_v31 = vpop.permute.xlu0 %2077  ;;  %2665 = vmatpush3.msra.mxu1 %v2202_v9  ;;  %v2108_v17 = vpop.permute.xlu1 %2107  ;;  %v4773_v9 = vld [vmem:[#allocation19_spill] sm:$0xff] }
 0x79d   :  { %v2200_v49 = vsel %vm1163_vm13, %v4529_v63, %v2108_v17  ;;  %v2201_v53 = vsel %vm1163_vm13, %v2108_v17, %v2110_v29  ;;  %2666 = vmatprep.subr.mxu1 %v4571_v1  ;;  %v2188_v63 = vsel %vm1163_vm13, %v2078_v31, %v4497_v56 }
 0x79e   :  { %2452 = vmatprep.subr.mxu0 %v2201_v53 }
 0x79f   :  { %2453 = vmatpush1.msra.mxu0 %v2200_v49  ;;  %v4774_v49 = vld [vmem:[#allocation18_spill] sm:$0xff] }
 0x7a0   :  { %v2060_v8 = vpop.permute.xlu0 %2059  ;;  %v2094_v48 = vpop.permute.xlu1 %2093 }
 0x7a1   :  { %v2195_v14 = vsel %vm1163_vm13, %v2094_v48, %v4495_v21  ;;  %v2194_v58 = vsel %vm1163_vm13, %v2092_v26, %v2094_v48  ;;  %v2179_v18 = vsel %vm1163_vm13, %v4548_v30, %v2060_v8 }
 0x7a2   :  { %2454 = vmatprep.subr.mxu0 %v2194_v58  ;;  %2667 = vmatpush3.msra.mxu1 %v2195_v14  ;;  %v4776_v14 = vld [vmem:[#allocation9_spill] sm:$0xff] }
 0x7a3   :  { %2455 = vmatpush1.msra.mxu0 %v2193_v41  ;;  %2668 = vmatprep.subr.mxu1 %v4571_v1 }
 0x7a4   :  { %v2046_v42 = vpop.permute.xlu0 %2045  ;;  %2669 = vmatpush3.msra.mxu1 %v2188_v63  ;;  %v2076_v12 = vpop.permute.xlu1 %2075 }
 0x7a5   :  { %v2186_v34 = vsel %vm1163_vm13, %v4543_v60, %v2076_v12  ;;  %v2187_v21 = vsel %vm1163_vm13, %v2076_v12, %v2078_v31  ;;  %2670 = vmatprep.subr.mxu1 %v4571_v1  ;;  %v2165_v60 = vsel %vm1163_vm13, %v4302_v59, %v4436_v55  ;;  %v4764_v59 = vld [vmem:[#allocation3_spill] sm:$0xff] }
 0x7a6   :  { %2456 = vmatprep.subr.mxu0 %v2187_v21 }
 0x7a7   :  { %2457 = vmatpush1.msra.mxu0 %v2186_v34 }
 0x7a8   :  { %v2048_v15 = vpop.permute.xlu0 %2047  ;;  %v2062_v2 = vpop.permute.xlu1 %2061 }
 0x7a9   :  { %v2181_v56 = vsel %vm1163_vm13, %v2062_v2, %v4501_v45  ;;  %v2180_v47 = vsel %vm1163_vm13, %v2060_v8, %v2062_v2  ;;  %v2174_v10 = vsel %vm1163_vm13, %v2046_v42, %v2048_v15  ;;  %v4775_v8 = vld [vmem:[#allocation10_spill] sm:$0xff] }
 0x7aa   :  { %2458 = vmatprep.subr.mxu0 %v2180_v47  ;;  %2671 = vmatpush3.msra.mxu1 %v2181_v56 }
 0x7ab   :  { %2459 = vmatpush1.msra.mxu0 %v2179_v18  ;;  %2672 = vmatprep.subr.mxu1 %v4571_v1 }
 0x7ac   :  { %2673 = vmatpush3.msra.mxu1 %v2174_v10  ;;  %v2044_v54 = vpop.permute.xlu1 %2043 }
 0x7ad   :  { %v2172_v23 = vsel %vm1163_vm13, %v4564_v33, %v2044_v54  ;;  %v2173_v38 = vsel %vm1163_vm13, %v2044_v54, %v2046_v42  ;;  %2674 = vmatprep.subr.mxu1 %v4571_v1  ;;  %v4767_v33 = vld [vmem:[#allocation14_spill] sm:$0xff]  ;;  %v4768_v1 = vld [vmem:[#allocation4_spill] sm:$0xff] }
 0x7ae   :  { %2460 = vmatprep.subr.mxu0 %v2173_v38 }
 0x7af   :  { %2461 = vmatpush1.msra.mxu0 %v2172_v23 }
 0x7b0   :  { %v2030_v45 = vpop.permute.xlu1 %2029 }
 0x7b1   :  { %v2166_v52 = vsel %vm1163_vm13, %v4436_v55, %v2030_v45 }
 0x7b2   :  { %2462 = vmatprep.subr.mxu0 %v2166_v52 }
 0x7b3   :  { %2463 = vmatpush1.msra.mxu0 %v2165_v60 }
 0x7b4   :  { %2608 = vmatmul.mubr.msk.f32.vlgmr.msra.gmra.mxu0 %vm1290_vm14, %v4558_v24  ;;  %v2032_v0 = vpop.permute.xlu1 %2031 }
 0x7b5   :  { %v2167_v32 = vsel %vm1163_vm13, %v2030_v45, %v2032_v0  ;;  %v2015_v30 = vpop.permute.xlu0 %2014 }
 0x7b6   :  { %2675 = vmatpush3.msra.mxu1 %v2167_v32 }
 0x7b7   :  { %2677 = vmatmul.mubr.msk.f32.vlgmr.msra.gmra.mxu1 %vm1290_vm14, %v4558_v24 }
 0x84d   :  { %v2356_v7 = vpop.f32.mrf.mxu0 }
 0x84e   :  { %v2357_v61 = vadd.f32 %v2356_v7, %v2015_v30 }
 0x84f   :  { %v2358_v19 = vpop.f32.mrf.mxu0 }
 0x850   :  { %v2573_v25 = vadd.f32 %v2357_v61, %v4763_v35  ;;  %v2359_v57 = vadd.f32 %v2358_v19, %v2015_v30 }
 0x852   :  { %v2580_v55 = vmul.f32 %v2573_v25, %v4764_v59  ;;  %v2574_v43 = vadd.f32 %v2359_v57, %v4765_v40  ;;  %v2427_v6 = vpop.f32.mrf.mxu1 }
 0x853   :  { %v2428_v20 = vadd.f32 %v2427_v6, %v2015_v30 }
 0x854   :  { %2587 = vst [vmem:[%s4686_s12] sm:$0xff] %v2580_v55  ;;  %v2581_v46 = vmul.f32 %v2574_v43, %v4766_v16  ;;  %v2429_v24 = vpop.f32.mrf.mxu1 }
 0x855   :  { %v2575_v28 = vadd.f32 %v2428_v20, %v4767_v33  ;;  %v2430_v36 = vadd.f32 %v2429_v24, %v2015_v30 }
 0x856   :  { %2588 = vst [vmem:[%s4686_s12 + $0x8] sm:$0xff] %v2581_v46 }
 0x857   :  { %v2582_v13 = vmul.f32 %v2575_v28, %v4768_v1  ;;  %v2576_v22 = vadd.f32 %v2430_v36, %v4769_v5 }
 0x859   :  { %2589 = vst [vmem:[%s4686_s12 + $0x10] sm:$0xff] %v2582_v13  ;;  %v2583_v11 = vmul.f32 %v2576_v22, %v4770_v3 }
 0x85b   :  { %2590 = vst [vmem:[%s4686_s12 + $0x18] sm:$0xff] %v2583_v11 }
 0x874   :  { %v2498_v29 = vpop.f32.mrf.mxu0 }
 0x875   :  { %v2499_v4 = vadd.f32 %v2498_v29, %v2015_v30 }
 0x876   :  { %v2500_v39 = vpop.f32.mrf.mxu0 }
 0x877   :  { %v2577_v51 = vadd.f32 %v2499_v4, %v4771_v50  ;;  %v2501_v26 = vadd.f32 %v2500_v39, %v2015_v30  ;;  %v2569_v44 = vpop.f32.mrf.mxu1 }
 0x878   :  { %v2570_v62 = vadd.f32 %v2569_v44, %v2015_v30 }
 0x879   :  { %v2584_v37 = vmul.f32 %v2577_v51, %v4772_v27  ;;  %v2578_v31 = vadd.f32 %v2501_v26, %v4773_v9  ;;  %v2678_v17 = vpop.f32.mrf.mxu1 }
 0x87a   :  { %v2579_v53 = vadd.f32 %v2570_v62, %v4774_v49 }
 0x87b   :  { %2591 = vst [vmem:[%s4686_s12 + $0x20] sm:$0xff] %v2584_v37  ;;  %v2585_v48 = vmul.f32 %v2578_v31, %v4775_v8 }
 0x87c   :  { %v2586_v58 = vmul.f32 %v2579_v53, %v4776_v14 }
 0x87d   :  { %2592 = vst [vmem:[%s4686_s12 + $0x28] sm:$0xff] %v2585_v48 }
 0x87e   :  { %2593 = vst.msk [vmem:[%s4686_s12 + $0x30] sm:$0xff] %vm458_vm2, %v2586_v58 }

</bundles_post_ra>
